<compile_context>
chip_gen: v6e
topology: v6e:2x2x1
jax: 0.10.0
libtpu: 0.0.40
codegen_flags: <defaults>
</compile_context>

<pallas_src>
import functools

import jax
import jax.numpy as jnp
from jax import lax
from jax.experimental import pallas as pl
from jax.experimental.pallas import tpu as pltpu


def _attn_kernel(cdt, use_approx_recip, hoist_v, bsub, n_valid, tk_size, *refs):
    """One (batch-block, q-tile, kv-tile) grid step.

    xq_ref : (Bs, C, TQ) f32    query-position slab of x (also the residual)
    xk_ref : (Bs, C, TK) f32/bf16  key/value-position slab of x
    mm_ref : (C, C)  cdt        M = Wk^T Wq
    w_ref  : (C, 1)  f32        Wk^T bq (key-side bias folded into y)
    v_ref  : (Bs, C, TK)        precomputed V tile      (only if hoist_v)
    wv_ref : (C, C) cdt, bv_ref: (C, 1) f32             (only if not hoist_v)
    scal_ref: (1,) f32 SMEM     [gamma]
    o_ref  : (Bs, C, TQ)        output block (written on the last kv step)
    scratch: y (Bs,C,TQ) cdt, mx/l (Bs,1,TQ) f32, acc (Bs,C,TQ) f32
    """
    if hoist_v:
        (xq_ref, xk_ref, mm_ref, w_ref, v_ref, scal_ref, o_ref,
         y_ref, mx_ref, l_ref, acc_ref) = refs
    else:
        (xq_ref, xk_ref, mm_ref, w_ref, wv_ref, bv_ref, scal_ref, o_ref,
         y_ref, mx_ref, l_ref, acc_ref) = refs

    ki = pl.program_id(2)
    nk = pl.num_programs(2)

    # ---- per-(batch-block, q-tile) init: first kv step only -----------------
    @pl.when(ki == 0)
    def _init():
        mm = mm_ref[...]
        w = w_ref[...]
        for b in range(bsub):
            xq = xq_ref[b].astype(cdt)                            # (C, TQ)
            # y = (Wk^T Wq) @ x_q + Wk^T bq : full-depth C contraction.
            y = lax.dot_general(mm, xq,
                                dimension_numbers=(((1,), (0,)), ((), ())),
                                preferred_element_type=jnp.float32)
            y_ref[b] = (y + w).astype(y_ref.dtype)
        mx_ref[...] = jnp.full(mx_ref.shape, -jnp.inf, dtype=jnp.float32)
        l_ref[...] = jnp.zeros(l_ref.shape, dtype=jnp.float32)
        acc_ref[...] = jnp.zeros(acc_ref.shape, dtype=jnp.float32)

    # Mask for padded key columns (only when N was padded to a multiple of 128).
    if n_valid is not None:
        key_idx = ki * tk_size + lax.broadcasted_iota(jnp.int32, (tk_size, 1), 0)
        key_valid = key_idx < n_valid                             # (TK, 1)

    if not hoist_v:
        wv = wv_ref[...]
        bv = bv_ref[...]

    # ---- every kv step -------------------------------------------------------
    for b in range(bsub):
        xk_c = xk_ref[b].astype(cdt)                              # (C, TK)

        # scores s[m, n] = k_m . q_n (keys on sublanes, queries on lanes).
        # The query-constant part of the logit (bk.(Wq x_n + bq)) is dropped:
        # it cancels in the softmax over the key axis.
        s = lax.dot_general(xk_c, y_ref[b],
                            dimension_numbers=(((0,), (0,)), ((), ())),
                            preferred_element_type=jnp.float32)   # (TK, TQ)
        if n_valid is not None:
            s = jnp.where(key_valid, s, -jnp.inf)

        # online softmax over the key axis (axis 0), f32 throughout
        m_prev = mx_ref[b]                                        # (1, TQ)
        m_new = jnp.maximum(m_prev, jnp.max(s, axis=0, keepdims=True))
        alpha = jnp.exp(m_prev - m_new)
        p = jnp.exp(s - m_new)                                    # (TK, TQ)
        l_ref[b] = alpha * l_ref[b] + jnp.sum(p, axis=0, keepdims=True)
        mx_ref[b] = m_new

        if hoist_v:
            v = v_ref[b].astype(cdt)                              # (C, TK)
        else:
            v = (lax.dot_general(wv, xk_c,
                                 dimension_numbers=(((1,), (0,)), ((), ())),
                                 preferred_element_type=jnp.float32)
                 + bv).astype(cdt)                                # (C, TK)

        acc_ref[b] = alpha * acc_ref[b] + lax.dot_general(
            v, p.astype(cdt),
            dimension_numbers=(((1,), (0,)), ((), ())),
            preferred_element_type=jnp.float32)                   # (C, TQ)

    # ---- finalize on the last kv step ----------------------------------------
    @pl.when(ki == nk - 1)
    def _finalize():
        gamma = scal_ref[0]
        inv_l = pl.reciprocal(l_ref[...], approx=use_approx_recip)  # (Bs,1,TQ)
        o_ref[...] = (gamma * (acc_ref[...] * inv_l)
                      + xq_ref[...].astype(jnp.float32)).astype(o_ref.dtype)


def _pick_tile(n, cap):
    """Largest multiple of 128 <= cap that divides n (n is a multiple of 128)."""
    t = max((min(cap, n) // 128) * 128, 128)
    while t > 128 and n % t != 0:
        t -= 128
    return t


def _pick_bsub(batch, n_q_tiles, n_tokens, channels, tq):
    """Pack batch elements per grid step only in the small-N regime, keeping
    >= 2 parallel (b, q) tiles (v7x dual-TensorCore) and small VMEM blocks."""
    if n_tokens > 512:
        return 1
    for cand in (8, 4, 2):
        if (batch % cand == 0
                and (batch // cand) * n_q_tiles >= 2
                and cand * channels * tq * 4 <= (4 << 20)):
            return cand
    return 1


def _vmem_limit_bytes(bsub, C, tq, tk, cdt_bytes, kv_bytes, hoist_v):
    f32 = 4
    est = 0
    est += 2 * bsub * C * tq * f32            # x_q blocks (double-buffered)
    est += 2 * bsub * C * tk * kv_bytes       # x_k blocks
    est += 2 * bsub * C * tq * f32            # output blocks
    est += 2 * (C * C * cdt_bytes + C * f32)  # M + w (constant-index, 2 bufs)
    if hoist_v:
        est += 2 * bsub * C * tk * kv_bytes   # V blocks
    else:
        est += 2 * (C * C * cdt_bytes + C * f32)
    est += bsub * C * tq * (cdt_bytes + f32)  # y + acc scratch
    est += 2 * bsub * tq * f32                # max / sum scratch
    est += 4 * tk * tq * f32                  # score / exp working set
    return int(min(max(2 * est, 32 << 20), 64 << 20))


def self_attention_pallas(x_nchw, wq, bq, wk, bk, wv, bv, gamma, *,
                          precise=False, max_tq=None, max_tk=256,
                          hoist_value=None):
    """x_nchw: (B, C, H, W); wq/wk: (C//8, C, 1, 1); wv: (C, C, 1, 1)."""
    B, C, H, W = x_nchw.shape
    N = H * W
    Cq = wq.shape[0]

    cdt = jnp.float32 if precise else jnp.bfloat16      # MXU-input dtype
    kv_dt = jnp.float32 if precise else jnp.bfloat16    # kv-stream HBM dtype

    # NCHW -> (B, C, N): a free reshape (N is the lane axis). Pad N up to a
    # multiple of 128 so tiles are always lane-dense and never full-N.
    x3 = x_nchw.reshape(B, C, N)
    n_pad = -(-N // 128) * 128
    if n_pad != N:
        x3p = jnp.pad(x3, ((0, 0), (0, 0), (0, n_pad - N)))
        n_valid = N
    else:
        x3p = x3
        n_valid = None

    x_q_in = x3p                                          # f32 (residual path)
    x_k_in = x3p if precise else x3p.astype(jnp.bfloat16)

    # Fold query/key projections + biases into full-depth operands.
    Wq2 = wq.reshape(Cq, C).astype(jnp.float32)
    Wk2 = wk.reshape(Cq, C).astype(jnp.float32)
    Mmat = (Wk2.T @ Wq2).astype(cdt)                      # (C, C)
    w_col = (Wk2.T @ bq.astype(jnp.float32)).reshape(C, 1)
    Wv2f = wv.reshape(C, C).astype(jnp.float32)
    bvf = bv.astype(jnp.float32)

    hoist_v = (C >= 128) if hoist_value is None else bool(hoist_value)
    if hoist_v:
        v_full = jnp.einsum('oc,bcn->bon', Wv2f, x3p) + bvf[None, :, None]
        v_in = v_full if precise else v_full.astype(jnp.bfloat16)

    scalars = jnp.asarray(gamma, jnp.float32).reshape(-1)[:1]   # (1,) -> SMEM

    # ---- tiling ---------------------------------------------------------------
    if max_tq is None:
        max_tq = 1024 if C <= 256 else 512
    tq = _pick_tile(n_pad, max_tq)
    if B * (n_pad // tq) < 2 and n_pad >= 256:
        tq = _pick_tile(n_pad, n_pad // 2)   # keep both v7x TensorCores fed
    tk = _pick_tile(n_pad, max_tk)
    n_qt = n_pad // tq
    bsub = _pick_bsub(B, n_qt, N, C, tq)
    grid = (B // bsub, n_qt, n_pad // tk)

    in_specs = [
        pl.BlockSpec((bsub, C, tq), lambda b, qi, ki: (b, 0, qi)),   # x (q tiles)
        pl.BlockSpec((bsub, C, tk), lambda b, qi, ki: (b, 0, ki)),   # x (kv tiles)
        pl.BlockSpec((C, C), lambda b, qi, ki: (0, 0)),              # M = Wk^T Wq
        pl.BlockSpec((C, 1), lambda b, qi, ki: (0, 0)),              # Wk^T bq
    ]
    inputs = [x_q_in, x_k_in, Mmat, w_col]
    if hoist_v:
        in_specs.append(pl.BlockSpec((bsub, C, tk), lambda b, qi, ki: (b, 0, ki)))
        inputs.append(v_in)
    else:
        in_specs.append(pl.BlockSpec((C, C), lambda b, qi, ki: (0, 0)))   # Wv
        in_specs.append(pl.BlockSpec((C, 1), lambda b, qi, ki: (0, 0)))   # bv
        inputs.extend([Wv2f.astype(cdt), bvf.reshape(C, 1)])
    in_specs.append(pl.BlockSpec(memory_space=pltpu.MemorySpace.SMEM))    # [gamma]
    inputs.append(scalars)

    kernel = functools.partial(_attn_kernel, cdt, not precise, hoist_v,
                               bsub, n_valid, tk)

    vmem_limit = _vmem_limit_bytes(bsub, C, tq, tk,
                                   jnp.dtype(cdt).itemsize,
                                   jnp.dtype(kv_dt).itemsize, hoist_v)

    out3 = pl.pallas_call(
        kernel,
        out_shape=jax.ShapeDtypeStruct((B, C, n_pad), x3.dtype),
        grid_spec=pltpu.PrefetchScalarGridSpec(
            num_scalar_prefetch=0,
            grid=grid,
            in_specs=in_specs,
            out_specs=pl.BlockSpec((bsub, C, tq), lambda b, qi, ki: (b, 0, qi)),
            scratch_shapes=[
                pltpu.VMEM((bsub, C, tq), cdt),          # y = M @ x_q + w
                pltpu.VMEM((bsub, 1, tq), jnp.float32),  # running max
                pltpu.VMEM((bsub, 1, tq), jnp.float32),  # running sum
                pltpu.VMEM((bsub, C, tq), jnp.float32),  # output accumulator
            ],
        ),
        compiler_params=pltpu.CompilerParams(
            dimension_semantics=("parallel", "parallel", "arbitrary"),
            vmem_limit_bytes=vmem_limit),
    )(*inputs)

    return out3[:, :, :N].reshape(B, C, H, W)


def _reference(x, wq, bq, wk, bk, wv, bv, gamma):
    """Pure-JAX replica of the PyTorch forward, for verification."""
    B, C, H, W = x.shape
    N = H * W
    Cq = wq.shape[0]
    xf = x.reshape(B, C, N)
    q = jnp.einsum('oc,bcn->bon', wq.reshape(Cq, C), xf) + bq[None, :, None]
    k = jnp.einsum('oc,bcn->bon', wk.reshape(Cq, C), xf) + bk[None, :, None]
    v = jnp.einsum('oc,bcn->bon', wv.reshape(C, C), xf) + bv[None, :, None]
    qT = jnp.transpose(q, (0, 2, 1))                           # (B, N, Cq)
    attn = jax.nn.softmax(jnp.einsum('bnc,bcm->bnm', qT, k), axis=-1)
    out = jnp.einsum('bcn,bmn->bcm', v, attn)                  # value @ attn^T
    return gamma * out.reshape(B, C, H, W) + x


def _make_inputs(key, B, C, H, W):
    Cq = max(C // 8, 1)
    ks = jax.random.split(key, 7)
    x = jax.random.normal(ks[0], (B, C, H, W), jnp.float32)
    wq = jax.random.normal(ks[1], (Cq, C, 1, 1), jnp.float32) * 0.1
    bq = jax.random.normal(ks[2], (Cq,), jnp.float32) * 0.1
    wk = jax.random.normal(ks[3], (Cq, C, 1, 1), jnp.float32) * 0.1
    bk = jax.random.normal(ks[4], (Cq,), jnp.float32) * 0.1
    wv = jax.random.normal(ks[5], (C, C, 1, 1), jnp.float32) * 0.1
    bv = jax.random.normal(ks[6], (C,), jnp.float32) * 0.1
    return x, wq, bq, wk, bk, wv, bv


if __name__ == "__main__":
    key = jax.random.PRNGKey(0)
    k1, k2, k3 = jax.random.split(key, 3)
    # nn.Parameter(torch.zeros(1)) -> gamma = 0; use a nonzero value so the
    # attention path actually contributes to the check.
    gamma = jnp.float32(0.5)

    # Case 1: precise f32 path, forced small tiles -> multi-tile flash
    # accumulation across kv steps and batch packing (bsub=2).
    args = _make_inputs(k1, 2, 16, 16, 16)                 # N = 256
    ref = _reference(*args, gamma)
    out = jax.block_until_ready(
        self_attention_pallas(*args, gamma, precise=True, max_tq=128, max_tk=128))
    assert out.shape == args[0].shape
    err = float(jnp.max(jnp.abs(out - ref)))
    assert err < 5e-3, f"precise-path mismatch vs reference: {err}"

    # Case 2: default fast path (bf16 kv stream, f32 acc, approx reciprocal).
    out = jax.block_until_ready(self_attention_pallas(*args, gamma))
    err = float(jnp.max(jnp.abs(out - ref)))
    assert err < 3e-2, f"fast-path mismatch vs reference: {err}"

    # Case 3: odd spatial size (N = 144 -> padded to 256, masked keys) with the
    # hoisted value-projection path forced on.
    args3 = _make_inputs(k2, 2, 16, 12, 12)
    ref3 = _reference(*args3, gamma)
    out3 = jax.block_until_ready(
        self_attention_pallas(*args3, gamma, hoist_value=True))
    err3 = float(jnp.max(jnp.abs(out3 - ref3)))
    assert err3 < 3e-2, f"padded/hoisted-path mismatch vs reference: {err3}"

    # Case 4: small-N / larger-batch regime (N = 64 -> padded, bsub = 4).
    args4 = _make_inputs(k3, 8, 16, 8, 8)
    ref4 = _reference(*args4, gamma)
    out4 = jax.block_until_ready(self_attention_pallas(*args4, gamma))
    err4 = float(jnp.max(jnp.abs(out4 - ref4)))
    assert err4 < 3e-2, f"batch-packed-path mismatch vs reference: {err4}"

    print("KERNEL_OK")
</pallas_src>

<mosaic_0001>
module attributes {stable_mosaic.version = 11 : i64} {
  func.func @_attn_kernel(%arg0: i32, %arg1: i32, %arg2: i32, %arg3: memref<2x16x128xf32, #tpu.memory_space<vmem>>, %arg4: memref<2x16x128xf32, #tpu.memory_space<vmem>>, %arg5: memref<16x16xf32, #tpu.memory_space<vmem>>, %arg6: memref<16x1xf32, #tpu.memory_space<vmem>>, %arg7: memref<16x16xf32, #tpu.memory_space<vmem>>, %arg8: memref<16x1xf32, #tpu.memory_space<vmem>>, %arg9: memref<1xf32, #tpu.memory_space<smem>>, %arg10: memref<2x16x128xf32, #tpu.memory_space<vmem>>, %arg11: memref<2x16x128xf32, #tpu.memory_space<vmem>>, %arg12: memref<2x1x128xf32, #tpu.memory_space<vmem>>, %arg13: memref<2x1x128xf32, #tpu.memory_space<vmem>>, %arg14: memref<2x16x128xf32, #tpu.memory_space<vmem>>) attributes {dimension_semantics = [#tpu.dimension_semantics<parallel>, #tpu.dimension_semantics<parallel>, #tpu.dimension_semantics<arbitrary>], iteration_bounds = array<i64: 1, 2, 2>, scalar_prefetch = 0 : i64, scratch_operands = 4 : i64, tpu.core_type = #tpu.core_type<tc>, window_params = [{transform_indices = @transform_0, window_bounds = array<i64: 2, 16, 128>}, {transform_indices = @transform_1, window_bounds = array<i64: 2, 16, 128>}, {pipeline_mode = #tpu.pipeline_mode<synchronous>, transform_indices = @transform_2, window_bounds = array<i64: 16, 16>}, {pipeline_mode = #tpu.pipeline_mode<synchronous>, transform_indices = @transform_3, window_bounds = array<i64: 16, 1>}, {pipeline_mode = #tpu.pipeline_mode<synchronous>, transform_indices = @transform_4, window_bounds = array<i64: 16, 16>}, {pipeline_mode = #tpu.pipeline_mode<synchronous>, transform_indices = @transform_5, window_bounds = array<i64: 16, 1>}, {transform_indices = @transform_6, window_bounds = array<i64: 1>}, {transform_indices = @transform_7, window_bounds = array<i64: 2, 16, 128>}]} {
    %c0_i32 = arith.constant 0 : i32
    %0 = arith.cmpi eq, %arg2, %c0_i32 : i32
    %1 = arith.extui %0 : i1 to i32
    %c0_i32_0 = arith.constant 0 : i32
    %2 = arith.cmpi ne, %1, %c0_i32_0 : i32
    scf.if %2 {
      %c0_61 = arith.constant 0 : index
      %c0_62 = arith.constant 0 : index
      %86 = vector.load %arg5[%c0_61, %c0_62] : memref<16x16xf32, #tpu.memory_space<vmem>>, vector<16x16xf32>
      %c0_63 = arith.constant 0 : index
      %c0_64 = arith.constant 0 : index
      %87 = vector.load %arg6[%c0_63, %c0_64] : memref<16x1xf32, #tpu.memory_space<vmem>>, vector<16x1xf32>
      %c0_65 = arith.constant 0 : index
      %c0_66 = arith.constant 0 : index
      %c0_67 = arith.constant 0 : index
      %88 = vector.load %arg3[%c0_65, %c0_66, %c0_67] : memref<2x16x128xf32, #tpu.memory_space<vmem>>, vector<1x16x128xf32>
      %89 = vector.shape_cast %88 : vector<1x16x128xf32> to vector<16x128xf32>
      %cst_68 = arith.constant dense<0.000000e+00> : vector<16x128xf32>
      %90 = tpu.matmul %86, %89, %cst_68 {dimension_numbers = #tpu.dot_dimension_numbers<[1], [0], [0], [1], [0, 0, 1, 1], [], []>} : vector<16x16xf32>, vector<16x128xf32>, vector<16x128xf32> -> vector<16x128xf32>
      %91 = vector.broadcast %87 : vector<16x1xf32> to vector<16x128xf32>
      %92 = arith.addf %90, %91 : vector<16x128xf32>
      %c0_69 = arith.constant 0 : index
      %c0_70 = arith.constant 0 : index
      %c0_71 = arith.constant 0 : index
      %93 = vector.load %arg11[%c0_69, %c0_70, %c0_71] : memref<2x16x128xf32, #tpu.memory_space<vmem>>, vector<1x16x128xf32>
      %94 = vector.shape_cast %93 : vector<1x16x128xf32> to vector<16x128xf32>
      %95 = vector.shape_cast %92 : vector<16x128xf32> to vector<1x16x128xf32>
      tpu.vector_store %arg11[%c0_69, %c0_70, %c0_71], %95 {strides = array<i32>} : memref<2x16x128xf32, #tpu.memory_space<vmem>>, vector<1x16x128xf32>,
      %c1_72 = arith.constant 1 : index
      %c0_73 = arith.constant 0 : index
      %c0_74 = arith.constant 0 : index
      %96 = vector.load %arg3[%c1_72, %c0_73, %c0_74] : memref<2x16x128xf32, #tpu.memory_space<vmem>>, vector<1x16x128xf32>
      %97 = vector.shape_cast %96 : vector<1x16x128xf32> to vector<16x128xf32>
      %cst_75 = arith.constant dense<0.000000e+00> : vector<16x128xf32>
      %98 = tpu.matmul %86, %97, %cst_75 {dimension_numbers = #tpu.dot_dimension_numbers<[1], [0], [0], [1], [0, 0, 1, 1], [], []>} : vector<16x16xf32>, vector<16x128xf32>, vector<16x128xf32> -> vector<16x128xf32>
      %99 = vector.broadcast %87 : vector<16x1xf32> to vector<16x128xf32>
      %100 = arith.addf %98, %99 : vector<16x128xf32>
      %c1_76 = arith.constant 1 : index
      %c0_77 = arith.constant 0 : index
      %c0_78 = arith.constant 0 : index
      %101 = vector.load %arg11[%c1_76, %c0_77, %c0_78] : memref<2x16x128xf32, #tpu.memory_space<vmem>>, vector<1x16x128xf32>
      %102 = vector.shape_cast %101 : vector<1x16x128xf32> to vector<16x128xf32>
      %103 = vector.shape_cast %100 : vector<16x128xf32> to vector<1x16x128xf32>
      tpu.vector_store %arg11[%c1_76, %c0_77, %c0_78], %103 {strides = array<i32>} : memref<2x16x128xf32, #tpu.memory_space<vmem>>, vector<1x16x128xf32>,
      %cst_79 = arith.constant 0xFF800000 : f32
      %104 = vector.broadcast %cst_79 : f32 to vector<2x1x128xf32>
      %c0_80 = arith.constant 0 : index
      %c0_81 = arith.constant 0 : index
      %c0_82 = arith.constant 0 : index
      %105 = vector.load %arg12[%c0_80, %c0_81, %c0_82] : memref<2x1x128xf32, #tpu.memory_space<vmem>>, vector<2x1x128xf32>
      tpu.vector_store %arg12[%c0_80, %c0_81, %c0_82], %104 {strides = array<i32>} : memref<2x1x128xf32, #tpu.memory_space<vmem>>, vector<2x1x128xf32>,
      %cst_83 = arith.constant 0.000000e+00 : f32
      %106 = vector.broadcast %cst_83 : f32 to vector<2x1x128xf32>
      %c0_84 = arith.constant 0 : index
      %c0_85 = arith.constant 0 : index
      %c0_86 = arith.constant 0 : index
      %107 = vector.load %arg13[%c0_84, %c0_85, %c0_86] : memref<2x1x128xf32, #tpu.memory_space<vmem>>, vector<2x1x128xf32>
      tpu.vector_store %arg13[%c0_84, %c0_85, %c0_86], %106 {strides = array<i32>} : memref<2x1x128xf32, #tpu.memory_space<vmem>>, vector<2x1x128xf32>,
      %cst_87 = arith.constant 0.000000e+00 : f32
      %108 = vector.broadcast %cst_87 : f32 to vector<2x16x128xf32>
      %c0_88 = arith.constant 0 : index
      %c0_89 = arith.constant 0 : index
      %c0_90 = arith.constant 0 : index
      %109 = vector.load %arg14[%c0_88, %c0_89, %c0_90] : memref<2x16x128xf32, #tpu.memory_space<vmem>>, vector<2x16x128xf32>
      tpu.vector_store %arg14[%c0_88, %c0_89, %c0_90], %108 {strides = array<i32>} : memref<2x16x128xf32, #tpu.memory_space<vmem>>, vector<2x16x128xf32>,
    } else {
    }
    %c0 = arith.constant 0 : index
    %c0_1 = arith.constant 0 : index
    %3 = vector.load %arg7[%c0, %c0_1] : memref<16x16xf32, #tpu.memory_space<vmem>>, vector<16x16xf32>
    %c0_2 = arith.constant 0 : index
    %c0_3 = arith.constant 0 : index
    %4 = vector.load %arg8[%c0_2, %c0_3] : memref<16x1xf32, #tpu.memory_space<vmem>>, vector<16x1xf32>
    %c0_4 = arith.constant 0 : index
    %c0_5 = arith.constant 0 : index
    %c0_6 = arith.constant 0 : index
    %5 = vector.load %arg4[%c0_4, %c0_5, %c0_6] : memref<2x16x128xf32, #tpu.memory_space<vmem>>, vector<1x16x128xf32>
    %6 = vector.shape_cast %5 : vector<1x16x128xf32> to vector<16x128xf32>
    %c0_7 = arith.constant 0 : index
    %c0_8 = arith.constant 0 : index
    %c0_9 = arith.constant 0 : index
    %7 = vector.load %arg11[%c0_7, %c0_8, %c0_9] : memref<2x16x128xf32, #tpu.memory_space<vmem>>, vector<1x16x128xf32>
    %8 = vector.shape_cast %7 : vector<1x16x128xf32> to vector<16x128xf32>
    %cst = arith.constant dense<0.000000e+00> : vector<128x128xf32>
    %9 = tpu.matmul %6, %8, %cst {dimension_numbers = #tpu.dot_dimension_numbers<[0], [0], [1], [1], [0, 1, 1, 1], [], []>} : vector<16x128xf32>, vector<16x128xf32>, vector<128x128xf32> -> vector<128x128xf32>
    %c0_10 = arith.constant 0 : index
    %c0_11 = arith.constant 0 : index
    %c0_12 = arith.constant 0 : index
    %10 = vector.load %arg12[%c0_10, %c0_11, %c0_12] : memref<2x1x128xf32, #tpu.memory_space<vmem>>, vector<1x1x128xf32>
    %11 = vector.shape_cast %10 : vector<1x1x128xf32> to vector<1x128xf32>
    %cst_13 = arith.constant dense<0xFF800000> : vector<128xf32>
    %12 = vector.multi_reduction <maximumf>, %9, %cst_13 [0] : vector<128x128xf32> to vector<128xf32>
    %13 = vector.shape_cast %12 : vector<128xf32> to vector<1x128xf32>
    %14 = arith.maximumf %11, %13 : vector<1x128xf32>
    %15 = arith.subf %11, %14 : vector<1x128xf32>
    %16 = math.exp %15 : vector<1x128xf32>
    %17 = vector.broadcast %14 : vector<1x128xf32> to vector<128x128xf32>
    %18 = arith.subf %9, %17 : vector<128x128xf32>
    %19 = math.exp %18 : vector<128x128xf32>
    %c0_14 = arith.constant 0 : index
    %c0_15 = arith.constant 0 : index
    %c0_16 = arith.constant 0 : index
    %20 = vector.load %arg13[%c0_14, %c0_15, %c0_16] : memref<2x1x128xf32, #tpu.memory_space<vmem>>, vector<1x1x128xf32>
    %21 = vector.shape_cast %20 : vector<1x1x128xf32> to vector<1x128xf32>
    %22 = arith.mulf %16, %21 : vector<1x128xf32>
    %cst_17 = arith.constant dense<0.000000e+00> : vector<128xf32>
    %23 = vector.multi_reduction <add>, %19, %cst_17 [0] : vector<128x128xf32> to vector<128xf32>
    %24 = vector.shape_cast %23 : vector<128xf32> to vector<1x128xf32>
    %25 = arith.addf %22, %24 : vector<1x128xf32>
    %c0_18 = arith.constant 0 : index
    %c0_19 = arith.constant 0 : index
    %c0_20 = arith.constant 0 : index
    %26 = vector.load %arg13[%c0_18, %c0_19, %c0_20] : memref<2x1x128xf32, #tpu.memory_space<vmem>>, vector<1x1x128xf32>
    %27 = vector.shape_cast %26 : vector<1x1x128xf32> to vector<1x128xf32>
    %28 = vector.shape_cast %25 : vector<1x128xf32> to vector<1x1x128xf32>
    tpu.vector_store %arg13[%c0_18, %c0_19, %c0_20], %28 {strides = array<i32>} : memref<2x1x128xf32, #tpu.memory_space<vmem>>, vector<1x1x128xf32>,
    %c0_21 = arith.constant 0 : index
    %c0_22 = arith.constant 0 : index
    %c0_23 = arith.constant 0 : index
    %29 = vector.load %arg12[%c0_21, %c0_22, %c0_23] : memref<2x1x128xf32, #tpu.memory_space<vmem>>, vector<1x1x128xf32>
    %30 = vector.shape_cast %29 : vector<1x1x128xf32> to vector<1x128xf32>
    %31 = vector.shape_cast %14 : vector<1x128xf32> to vector<1x1x128xf32>
    tpu.vector_store %arg12[%c0_21, %c0_22, %c0_23], %31 {strides = array<i32>} : memref<2x1x128xf32, #tpu.memory_space<vmem>>, vector<1x1x128xf32>,
    %cst_24 = arith.constant dense<0.000000e+00> : vector<16x128xf32>
    %32 = tpu.matmul %3, %6, %cst_24 {dimension_numbers = #tpu.dot_dimension_numbers<[1], [0], [0], [1], [0, 0, 1, 1], [], []>} : vector<16x16xf32>, vector<16x128xf32>, vector<16x128xf32> -> vector<16x128xf32>
    %33 = vector.broadcast %4 : vector<16x1xf32> to vector<16x128xf32>
    %34 = arith.addf %32, %33 : vector<16x128xf32>
    %c0_25 = arith.constant 0 : index
    %c0_26 = arith.constant 0 : index
    %c0_27 = arith.constant 0 : index
    %35 = vector.load %arg14[%c0_25, %c0_26, %c0_27] : memref<2x16x128xf32, #tpu.memory_space<vmem>>, vector<1x16x128xf32>
    %36 = vector.shape_cast %35 : vector<1x16x128xf32> to vector<16x128xf32>
    %37 = vector.broadcast %16 : vector<1x128xf32> to vector<16x128xf32>
    %38 = arith.mulf %37, %36 : vector<16x128xf32>
    %cst_28 = arith.constant dense<0.000000e+00> : vector<16x128xf32>
    %39 = tpu.matmul %34, %19, %cst_28 {dimension_numbers = #tpu.dot_dimension_numbers<[1], [0], [0], [1], [0, 0, 1, 1], [], []>} : vector<16x128xf32>, vector<128x128xf32>, vector<16x128xf32> -> vector<16x128xf32>
    %40 = arith.addf %38, %39 : vector<16x128xf32>
    %c0_29 = arith.constant 0 : index
    %c0_30 = arith.constant 0 : index
    %c0_31 = arith.constant 0 : index
    %41 = vector.load %arg14[%c0_29, %c0_30, %c0_31] : memref<2x16x128xf32, #tpu.memory_space<vmem>>, vector<1x16x128xf32>
    %42 = vector.shape_cast %41 : vector<1x16x128xf32> to vector<16x128xf32>
    %43 = vector.shape_cast %40 : vector<16x128xf32> to vector<1x16x128xf32>
    tpu.vector_store %arg14[%c0_29, %c0_30, %c0_31], %43 {strides = array<i32>} : memref<2x16x128xf32, #tpu.memory_space<vmem>>, vector<1x16x128xf32>,
    %c1 = arith.constant 1 : index
    %c0_32 = arith.constant 0 : index
    %c0_33 = arith.constant 0 : index
    %44 = vector.load %arg4[%c1, %c0_32, %c0_33] : memref<2x16x128xf32, #tpu.memory_space<vmem>>, vector<1x16x128xf32>
    %45 = vector.shape_cast %44 : vector<1x16x128xf32> to vector<16x128xf32>
    %c1_34 = arith.constant 1 : index
    %c0_35 = arith.constant 0 : index
    %c0_36 = arith.constant 0 : index
    %46 = vector.load %arg11[%c1_34, %c0_35, %c0_36] : memref<2x16x128xf32, #tpu.memory_space<vmem>>, vector<1x16x128xf32>
    %47 = vector.shape_cast %46 : vector<1x16x128xf32> to vector<16x128xf32>
    %cst_37 = arith.constant dense<0.000000e+00> : vector<128x128xf32>
    %48 = tpu.matmul %45, %47, %cst_37 {dimension_numbers = #tpu.dot_dimension_numbers<[0], [0], [1], [1], [0, 1, 1, 1], [], []>} : vector<16x128xf32>, vector<16x128xf32>, vector<128x128xf32> -> vector<128x128xf32>
    %c1_38 = arith.constant 1 : index
    %c0_39 = arith.constant 0 : index
    %c0_40 = arith.constant 0 : index
    %49 = vector.load %arg12[%c1_38, %c0_39, %c0_40] : memref<2x1x128xf32, #tpu.memory_space<vmem>>, vector<1x1x128xf32>
    %50 = vector.shape_cast %49 : vector<1x1x128xf32> to vector<1x128xf32>
    %cst_41 = arith.constant dense<0xFF800000> : vector<128xf32>
    %51 = vector.multi_reduction <maximumf>, %48, %cst_41 [0] : vector<128x128xf32> to vector<128xf32>
    %52 = vector.shape_cast %51 : vector<128xf32> to vector<1x128xf32>
    %53 = arith.maximumf %50, %52 : vector<1x128xf32>
    %54 = arith.subf %50, %53 : vector<1x128xf32>
    %55 = math.exp %54 : vector<1x128xf32>
    %56 = vector.broadcast %53 : vector<1x128xf32> to vector<128x128xf32>
    %57 = arith.subf %48, %56 : vector<128x128xf32>
    %58 = math.exp %57 : vector<128x128xf32>
    %c1_42 = arith.constant 1 : index
    %c0_43 = arith.constant 0 : index
    %c0_44 = arith.constant 0 : index
    %59 = vector.load %arg13[%c1_42, %c0_43, %c0_44] : memref<2x1x128xf32, #tpu.memory_space<vmem>>, vector<1x1x128xf32>
    %60 = vector.shape_cast %59 : vector<1x1x128xf32> to vector<1x128xf32>
    %61 = arith.mulf %55, %60 : vector<1x128xf32>
    %cst_45 = arith.constant dense<0.000000e+00> : vector<128xf32>
    %62 = vector.multi_reduction <add>, %58, %cst_45 [0] : vector<128x128xf32> to vector<128xf32>
    %63 = vector.shape_cast %62 : vector<128xf32> to vector<1x128xf32>
    %64 = arith.addf %61, %63 : vector<1x128xf32>
    %c1_46 = arith.constant 1 : index
    %c0_47 = arith.constant 0 : index
    %c0_48 = arith.constant 0 : index
    %65 = vector.load %arg13[%c1_46, %c0_47, %c0_48] : memref<2x1x128xf32, #tpu.memory_space<vmem>>, vector<1x1x128xf32>
    %66 = vector.shape_cast %65 : vector<1x1x128xf32> to vector<1x128xf32>
    %67 = vector.shape_cast %64 : vector<1x128xf32> to vector<1x1x128xf32>
    tpu.vector_store %arg13[%c1_46, %c0_47, %c0_48], %67 {strides = array<i32>} : memref<2x1x128xf32, #tpu.memory_space<vmem>>, vector<1x1x128xf32>,
    %c1_49 = arith.constant 1 : index
    %c0_50 = arith.constant 0 : index
    %c0_51 = arith.constant 0 : index
    %68 = vector.load %arg12[%c1_49, %c0_50, %c0_51] : memref<2x1x128xf32, #tpu.memory_space<vmem>>, vector<1x1x128xf32>
    %69 = vector.shape_cast %68 : vector<1x1x128xf32> to vector<1x128xf32>
    %70 = vector.shape_cast %53 : vector<1x128xf32> to vector<1x1x128xf32>
    tpu.vector_store %arg12[%c1_49, %c0_50, %c0_51], %70 {strides = array<i32>} : memref<2x1x128xf32, #tpu.memory_space<vmem>>, vector<1x1x128xf32>,
    %cst_52 = arith.constant dense<0.000000e+00> : vector<16x128xf32>
    %71 = tpu.matmul %3, %45, %cst_52 {dimension_numbers = #tpu.dot_dimension_numbers<[1], [0], [0], [1], [0, 0, 1, 1], [], []>} : vector<16x16xf32>, vector<16x128xf32>, vector<16x128xf32> -> vector<16x128xf32>
    %72 = vector.broadcast %4 : vector<16x1xf32> to vector<16x128xf32>
    %73 = arith.addf %71, %72 : vector<16x128xf32>
    %c1_53 = arith.constant 1 : index
    %c0_54 = arith.constant 0 : index
    %c0_55 = arith.constant 0 : index
    %74 = vector.load %arg14[%c1_53, %c0_54, %c0_55] : memref<2x16x128xf32, #tpu.memory_space<vmem>>, vector<1x16x128xf32>
    %75 = vector.shape_cast %74 : vector<1x16x128xf32> to vector<16x128xf32>
    %76 = vector.broadcast %55 : vector<1x128xf32> to vector<16x128xf32>
    %77 = arith.mulf %76, %75 : vector<16x128xf32>
    %cst_56 = arith.constant dense<0.000000e+00> : vector<16x128xf32>
    %78 = tpu.matmul %73, %58, %cst_56 {dimension_numbers = #tpu.dot_dimension_numbers<[1], [0], [0], [1], [0, 0, 1, 1], [], []>} : vector<16x128xf32>, vector<128x128xf32>, vector<16x128xf32> -> vector<16x128xf32>
    %79 = arith.addf %77, %78 : vector<16x128xf32>
    %c1_57 = arith.constant 1 : index
    %c0_58 = arith.constant 0 : index
    %c0_59 = arith.constant 0 : index
    %80 = vector.load %arg14[%c1_57, %c0_58, %c0_59] : memref<2x16x128xf32, #tpu.memory_space<vmem>>, vector<1x16x128xf32>
    %81 = vector.shape_cast %80 : vector<1x16x128xf32> to vector<16x128xf32>
    %82 = vector.shape_cast %79 : vector<16x128xf32> to vector<1x16x128xf32>
    tpu.vector_store %arg14[%c1_57, %c0_58, %c0_59], %82 {strides = array<i32>} : memref<2x16x128xf32, #tpu.memory_space<vmem>>, vector<1x16x128xf32>,
    %c1_i32 = arith.constant 1 : i32
    %83 = arith.cmpi eq, %arg2, %c1_i32 : i32
    %84 = arith.extui %83 : i1 to i32
    %c0_i32_60 = arith.constant 0 : i32
    %85 = arith.cmpi ne, %84, %c0_i32_60 : i32
    scf.if %85 {
      %c0_61 = arith.constant 0 : index
      %86 = memref.load %arg9[%c0_61] : memref<1xf32, #tpu.memory_space<smem>>
      %c0_62 = arith.constant 0 : index
      %c0_63 = arith.constant 0 : index
      %c0_64 = arith.constant 0 : index
      %87 = vector.load %arg13[%c0_62, %c0_63, %c0_64] : memref<2x1x128xf32, #tpu.memory_space<vmem>>, vector<2x1x128xf32>
      %88 = tpu.reciprocal %87 : vector<2x1x128xf32> -> vector<2x1x128xf32>
      %c0_65 = arith.constant 0 : index
      %c0_66 = arith.constant 0 : index
      %c0_67 = arith.constant 0 : index
      %89 = vector.load %arg14[%c0_65, %c0_66, %c0_67] : memref<2x16x128xf32, #tpu.memory_space<vmem>>, vector<2x16x128xf32>
      %90 = vector.broadcast %88 : vector<2x1x128xf32> to vector<2x16x128xf32>
      %91 = arith.mulf %89, %90 : vector<2x16x128xf32>
      %92 = vector.broadcast %86 : f32 to vector<2x16x128xf32>
      %93 = arith.mulf %92, %91 : vector<2x16x128xf32>
      %c0_68 = arith.constant 0 : index
      %c0_69 = arith.constant 0 : index
      %c0_70 = arith.constant 0 : index
      %94 = vector.load %arg3[%c0_68, %c0_69, %c0_70] : memref<2x16x128xf32, #tpu.memory_space<vmem>>, vector<2x16x128xf32>
      %95 = arith.addf %93, %94 : vector<2x16x128xf32>
      %c0_71 = arith.constant 0 : index
      %c0_72 = arith.constant 0 : index
      %c0_73 = arith.constant 0 : index
      %96 = vector.load %arg10[%c0_71, %c0_72, %c0_73] : memref<2x16x128xf32, #tpu.memory_space<vmem>>, vector<2x16x128xf32>
      tpu.vector_store %arg10[%c0_71, %c0_72, %c0_73], %95 {strides = array<i32>} : memref<2x16x128xf32, #tpu.memory_space<vmem>>, vector<2x16x128xf32>,
    } else {
    }
    return
  }
  func.func @transform_0(%arg0: i32, %arg1: i32, %arg2: i32) -> (i32, i32, i32) {
    %c0_i32 = arith.constant 0 : i32
    %c0_i32_0 = arith.constant 0 : i32
    return %arg0, %c0_i32, %arg1 : i32, i32, i32
  }
  func.func @transform_1(%arg0: i32, %arg1: i32, %arg2: i32) -> (i32, i32, i32) {
    %c0_i32 = arith.constant 0 : i32
    %c0_i32_0 = arith.constant 0 : i32
    return %arg0, %c0_i32, %arg2 : i32, i32, i32
  }
  func.func @transform_2(%arg0: i32, %arg1: i32, %arg2: i32) -> (i32, i32) {
    %c0_i32 = arith.constant 0 : i32
    %c0_i32_0 = arith.constant 0 : i32
    %c0_i32_1 = arith.constant 0 : i32
    return %c0_i32, %c0_i32_0 : i32, i32
  }
  func.func @transform_3(%arg0: i32, %arg1: i32, %arg2: i32) -> (i32, i32) {
    %c0_i32 = arith.constant 0 : i32
    %c0_i32_0 = arith.constant 0 : i32
    %c0_i32_1 = arith.constant 0 : i32
    return %c0_i32, %c0_i32_0 : i32, i32
  }
  func.func @transform_4(%arg0: i32, %arg1: i32, %arg2: i32) -> (i32, i32) {
    %c0_i32 = arith.constant 0 : i32
    %c0_i32_0 = arith.constant 0 : i32
    %c0_i32_1 = arith.constant 0 : i32
    return %c0_i32, %c0_i32_0 : i32, i32
  }
  func.func @transform_5(%arg0: i32, %arg1: i32, %arg2: i32) -> (i32, i32) {
    %c0_i32 = arith.constant 0 : i32
    %c0_i32_0 = arith.constant 0 : i32
    %c0_i32_1 = arith.constant 0 : i32
    return %c0_i32, %c0_i32_0 : i32, i32
  }
  func.func @transform_6(%arg0: i32, %arg1: i32, %arg2: i32) -> i32 {
    %c0_i32 = arith.constant 0 : i32
    %c0_i32_0 = arith.constant 0 : i32
    return %c0_i32 : i32
  }
  func.func @transform_7(%arg0: i32, %arg1: i32, %arg2: i32) -> (i32, i32, i32) {
    %c0_i32 = arith.constant 0 : i32
    %c0_i32_0 = arith.constant 0 : i32
    return %arg0, %c0_i32, %arg1 : i32, i32, i32
  }
}

</mosaic_0001>

<bundles_post_ra>
// kernel: tpu_custom_call.1
= control target key start
LH: loop header
LB: loop body
LE: loop exit
PB: predicated region body
PF: predicated region fallthrough
CT: control target
= control target key end

     0   :  { %s3133_s0 = inlined_call_operand.hbm [shape: f32[2,16,256], index: 0, kind: input, shape index: {}]   ;;  %s3134_s1 = inlined_call_operand.hbm [shape: f32[2,16,256], index: 1, kind: input, shape index: {}]   ;;  %s3135_s2 = inlined_call_operand.vmem [shape: f32[16,16], index: 2, kind: input, shape index: {}]   ;;  %s3136_s3 = inlined_call_operand.vmem [shape: f32[16,1], index: 3, kind: input, shape index: {}]   ;;  %s3137_s4 = inlined_call_operand.vmem [shape: f32[16,16], index: 4, kind: input, shape index: {}]   ;;  %s3138_s5 = inlined_call_operand.vmem [shape: f32[16,1], index: 5, kind: input, shape index: {}]   ;;  %s3139_s6 = inlined_call_operand.<no memory space> [shape: f32[1], index: 6, kind: input, shape index: {}]   ;;  %s3140_s7 = inlined_call_operand.hbm [shape: f32[2,16,256], index: 7, kind: output, shape index: {}]  }
   0x1   :  { %3155 = sst [smem:[#allocation22_spill]] %s3133_s0 }
   0x2   :  { %3156 = sst [smem:[#allocation23_spill]] %s3138_s5 }
   0x3   :  { %3157 = sst [smem:[#allocation24_spill]] %s3140_s7 }
   0x4   :  { %12 = sst [smem:[#allocation6]] %s3139_s6 }
   0x5   :  { %13 = vsyncpa [#allocation8], 0 }
   0x6   :  { %15 = vsyncpa [#allocation8 + $0x1], 0 }
   0x7   :  { %16 = vsyncpa [#allocation11], 0 }
   0x8   :  { %18 = vsyncpa [#allocation11 + $0x1], 0 }
   0x9   :  { %19 = vsyncpa [#allocation9], 0 }
   0xa   :  { %21 = vsyncpa [#allocation9 + $0x1], 0  ;;  %s2500_s26 = smov 0   ;;  %s2502_s27 = smov 0  }
   0xb   :  { %s2504_s28 = smov 0   ;;  %s2506_s29 = smov 0  }
   0xc   :  { %s2508_s30 = smov 0   ;;  %s2510_s8 = smov 0  }
   0xd   :  { %s2512_s9 = smov 0   ;;  %s2514_s6 = smov 0  }
   0xe   :  { %s2516_s10 = smov 0   ;;  %s2518_s11 = smov 0  }
   0xf   :  { %s2520_s12 = smov 0  }
  0x10 LB: > { %3158 = sst [smem:[#allocation16_spill]] %s2414_s29  ;;  %s1765_s13 = sadd.s32 4294967295, %s2442_s12   ;;  %s2442_s12 = sphi %s2520_s12, %s27_s12   ;;  %s2438_s11 = sphi %s2518_s11, %s3200_s11   ;;  %s2434_s10 = sphi %s2516_s10, %s3199_s10   ;;  %s2430_s6 = sphi %s2514_s6, %s3198_s6   ;;  %s2426_s9 = sphi %s2512_s9, %s3197_s9   ;;  %s2422_s8 = sphi %s2510_s8, %s3196_s8   ;;  %s2418_s30 = sphi %s2508_s30, %s3195_s30   ;;  %s2414_s29 = sphi %s2506_s29, %s3194_s29   ;;  %s2410_s28 = sphi %s2504_s28, %s3193_s28   ;;  %s2406_s27 = sphi %s2502_s27, %s3192_s27   ;;  %s2402_s26 = sphi %s2500_s26, %s3191_s26  }
  0x11   : > { %3159 = sst [smem:[#allocation17_spill]] %s2430_s6  ;;  %s1766_s14 = sadd.s32 4294967294, %s2442_s12  }
  0x12   : > { %p62_p0 = scmp.ne.s32.totalorder %s2422_s8, %s2418_s30  ;;  %p3144_p1 = scmp.eq.s32.totalorder %s2442_s12, 0 }
  0x13   : > { %p68_p2 = scmp.ne.s32.totalorder %s2418_s30, %s2414_s29  ;;  %p2563_p3 = scmp.eq.s32.totalorder %s1765_s13, 0 }
  0x14   : > { %p2569_p4 = por %p3144_p1, %p62_p0  ;;  %p227_p5 = scmp.eq.s32.totalorder %s1765_s13, 3 }
  0x15   : > { %p2575_p6 = por %p2563_p3, %p68_p2  ;;  %p233_p7 = scmp.eq.s32.totalorder %s1766_s14, 3 }
  0x16   : > { %p2579_p8 = por %p227_p5, %p62_p0  ;;  %p3145_p10 = scmp.lt.s32.totalorder %s2442_s12, 4 }
  0x17   : > { %p2583_p9 = por %p233_p7, %p68_p2  ;;  %s268_s21 = sand.u32 1, %s2422_s8  }
  0x18   : > { %s3163_s19 = scalar_select %p2579_p8, 1, 0 }
  0x19   : > { %s3165_s20 = scalar_select %p2583_p9, 1, 0 }
  0x1a   : > { %3164 = sst [smem:[#allocation18_spill]] %s3163_s19  ;;  %s1770_s22 = sshll.u32 %s2438_s11, 7 }
  0x1b   : > { %3166 = sst [smem:[#allocation19_spill]] %s3165_s20  ;;  %s1769_s23 = sshll.u32 %s268_s21, 5 }
  0x1c   : > { %s3167_s0 = sld [smem:[#allocation22_spill]]  ;;  %s272_s15 = scalar_lea.vmem [#allocation7], %s1769_s23 }
  0x1d   : > { %s281_s29 = sshll.u32 %s272_s15, 4  ;;  %p2597_p11 = pnand %p3145_p10, %p2569_p4  ;;  %s282_s29 = int_to_ptr.vmem [resolvable:$true] %s281_s29 }
  0x1e   : > { %p1773_p12 = scmp.ge.s32.totalorder %s2442_s12, 1  ;;  %s269_s20 = scalar_lea.sflag [#allocation8], %s268_s21 }
  0x1f   : > { %p2264_p13 = pneg %p2597_p11  ;;  %s2275_s7 = scalar_lea.vmem %s282_s29, 512 }
  0x20   : > { %p2276_p0 = scmp.ne.s32.totalorder %s282_s29, %s2275_s7  ;;  %s2444_s24 = smov [#allocation7]  }
  0x22   : > { %s280_s13 = scalar_lea.hbm %s3167_s0, %s1770_s22  ;;  %p2278_p2 = pnand %p2276_p0, %p2264_p13 }
  0x23   : > { %s2280_s22 = sshll.u32 %s2444_s24, 4  ;;  %s2281_s22 = int_to_ptr.vmem [resolvable:$false] %s2280_s22 }
  0x24   : > { %p2279_p5 = pneg %p2278_p2  ;;  %s2282_s15 = scalar_lea.vmem %s2281_s22, 1024 }
  0x25   : > { %p2283_p7 = scmp.lt.s32.totalorder %s282_s29, %s2281_s22  ;;  %p2284_p1 = scmp.lt.s32.totalorder %s2282_s15, %s2275_s7 }
  0x27   : > { %p2285_p4 = por %p2284_p1, %p2283_p7 }
  0x29   : > { %p2286_p10 = pnand %p2285_p4, %p2279_p5 }
  0x2b   : > { %2289 = shalt.err (!%p2286_p10)
}
  0x2c   : > { %s3146_s17 = smov 256   ;;  %s3147_s21 = smov 128  }
  0x2d   : > { %s3148_s7 = smov 8   ;;  %p312_p1 = scmp.lt.s32.totalorder %s2442_s12, 5 }
  0x2e   : > { %2078 = dma.hbm_to_vmem [thread:$0]  (!%p2597_p11), %s280_s13, 512, %s282_s29, %s269_s20, %s3146_s17, %s3147_s21, %s3148_s7  }
  0x2f   : > { %p2612_p10 = pnand %p1773_p12, %p312_p1  ;;  %s55_s25 = sadd.s32 1, %s2422_s8 }
  0x30   : > { %s39_s24 = sadd.s32 1, %s2434_s10  ;;  %s83_s22 = sadd.s32 1, %s2410_s28 }
  0x31   : > { %p40_p13 = scmp.ge.s32.totalorder %s39_s24, 2  ;;  %p90_p0 = scmp.ne.s32.totalorder %s2410_s28, %s2406_s27 }
  0x32   : > { %p96_p2 = scmp.ne.s32.totalorder %s2406_s27, %s2402_s26  ;;  %s3171_s14 = sadd.s32 1, %s2438_s11 }
  0x33   : > { %s3202_s24 = smov (%p40_p13, %s39_s24), 0  ;;  %s3204_s14 = smov (!%p40_p13, %s3171_s14), %s2438_s11 }
  0x34   : > { %3170 = sst [smem:[#allocation20_spill]] %s3202_s24  ;;  %s79_s29 = ssub.s32 %s2434_s10, %s3202_s24 }
  0x35   : > { %s291_s20 = sand.u32 1, %s2410_s28   ;;  %p44_p11 = scmp.ge.s32.totalorder %s3204_s14, 2 }
  0x36   : > { %p81_p12 = scmp.eq.s32.totalorder %s79_s29, 0  ;;  %p3172_p5 = scmp.eq.s32.totalorder %s2442_s12, 0 }
  0x37   : > { %p2639_p4 = por %p96_p2, %p2563_p3  ;;  %s3206_s14 = smov (%p44_p11, %s3204_s14), 0 }
  0x38   : > { %p2633_p7 = por %p90_p0, %p3172_p5  ;;  %s51_s17 = ssub.s32 %s2438_s11, %s3206_s14 }
  0x39   : > { %s2646_s15 = scalar_select %p81_p12, %s2410_s28, %s83_s22  }
  0x3a   : > { %s1771_s21 = sshll.u32 %s291_s20, 5  ;;  %p53_p1 = scmp.eq.s32.totalorder %s51_s17, 0 }
  0x3b   : > { %s1772_s29 = sshll.u32 %s2434_s10, 7  ;;  %s295_s7 = scalar_lea.vmem [#allocation10], %s1771_s21 }
  0x3c   : > { %s304_s0 = sshll.u32 %s295_s7, 4  ;;  %s303_s6 = scalar_lea.hbm %s3134_s1, %s1772_s29  ;;  %s305_s0 = int_to_ptr.vmem [resolvable:$true] %s304_s0 }
  0x3d   : > { %s2652_s24 = scalar_select %p53_p1, %s2422_s8, %s55_s25  }
  0x3e   : > { %p3175_p3 = scmp.lt.s32.totalorder %s2442_s12, 4  ;;  %s292_s22 = scalar_lea.sflag [#allocation11], %s291_s20 }
  0x3f   : > { %s2303_s17 = scalar_lea.vmem %s305_s0, 512  ;;  %s2448_s21 = smov [#allocation10]  }
  0x40   : > { %p2661_p13 = pnand %p3175_p3, %p2633_p7  ;;  %p2304_p2 = scmp.ne.s32.totalorder %s305_s0, %s2303_s17 }
  0x41   : > { %s2308_s7 = sshll.u32 %s2448_s21, 4  ;;  %s2309_s7 = int_to_ptr.vmem [resolvable:$false] %s2308_s7 }
  0x42   : > { %p2292_p0 = pneg %p2661_p13  ;;  %s2310_s19 = scalar_lea.vmem %s2309_s7, 1024 }
  0x43   : > { %p2311_p5 = scmp.lt.s32.totalorder %s305_s0, %s2309_s7  ;;  %p2312_p1 = scmp.lt.s32.totalorder %s2310_s19, %s2303_s17 }
  0x44   : > { %p2306_p11 = pnand %p2304_p2, %p2292_p0 }
  0x45   : > { %p2313_p9 = por %p2312_p1, %p2311_p5 }
  0x46   : > { %p2307_p12 = pneg %p2306_p11 }
  0x48   : > { %p2314_p8 = pnand %p2313_p9, %p2307_p12 }
  0x4a   : > { %2317 = shalt.err (!%p2314_p8)
}
  0x4b   : > { %s3177_s25 = smov 8   ;;  %s3178_s13 = smov 128  }
  0x4c   : > { %s3179_s20 = smov 256   ;;  %316 = sbr.rel (%p2612_p10) target bundleno = 1207 (0x4b7), region = 48 }
  0x4d   : > { %2081 = dma.hbm_to_vmem [thread:$0]  (!%p2661_p13), %s303_s6, 512, %s305_s0, %s292_s22, %s3179_s20, %s3178_s13, %s3177_s25  }
  0x51   : > { %s2675_s29 = sand.u32 1, %s2418_s30  }
  0x52   : > { %s1774_s16 = sshll.u32 %s2675_s29, 5  ;;  %s319_s17 = scalar_lea.sflag [#allocation8], %s2675_s29 }
  0x53   : > { %s2679_s21 = scalar_lea.vmem [#allocation7], %s1774_s16 }
  0x54   : > { %2389 = dma.done.wait (%p2575_p6), %s319_s17, 512  }
  0x55   : > { %2391 = vsyncadd (%p2575_p6), %s319_s17, 4294966784  ;;  %s327_s0 = sand.u32 1, %s2406_s27  }
  0x56   : > { %s1775_s5 = sshll.u32 %s327_s0, 5  ;;  %s328_s6 = scalar_lea.sflag [#allocation11], %s327_s0 }
  0x57   : > { %s2686_s23 = scalar_lea.vmem [#allocation10], %s1775_s5 }
  0x58   : > { %2393 = dma.done.wait (%p2639_p4), %s328_s6, 512  }
  0x59   : > { %2395 = vsyncadd (%p2639_p4), %s328_s6, 4294966784  ;;  %s2692_s22 = scalar_lea.vmem [#allocation12], %s1774_s16  ;;  %p1777_p8 = scmp.ne.s32.totalorder %s2426_s9, 0 }
  0x5b   : > { %373 = sbr.rel (%p1777_p8) target bundleno = 300 (0x12c), region = 60 }
  0x60   : > { %v379_v0 = vld [vmem:[%s2679_s21 + $0x8] sm:$0xff]  ;;  %v1781_v1 = vld [vmem:[%s2679_s21 + $0x18] sm:$0xff]  ;;  %v378_v2 = vld [vmem:[%s2679_s21] sm:$0xff]  ;;  %vm390_vm0 = vcmask 130048   ;;  %v2449_v7 = vmov 0   ;;  %v2450_v9 = vmov -inf  }
  0x61   : > { %1915 = vmatprep.subr.mxu0 %v379_v0  ;;  %1922 = vmatprep.subr.mxu1 %v1781_v1  ;;  %v1780_v3 = vld [vmem:[%s2679_s21 + $0x10] sm:$0xff]  ;;  %v374_v4 = vld [vmem:[%s3135_s2] sm:$0xff]  ;;  %v375_v5 = vld [vmem:[%s3135_s2 + $0x8] sm:$0xff]  ;;  %555 = vst [vmem:[#allocation3] sm:$0x1] %v2450_v9  ;;  %v2451_v10 = vmov 0.0  }
  0x62   : > { %1916 = vmatpush3.msra.mxu0 %v379_v0  ;;  %1923 = vmatpush3.msra.mxu1 %v1781_v1  ;;  %v376_v6 = vld [vmem:[%s3136_s3] sm:$0xff]  ;;  %v377_v8 = vld [vmem:[%s3136_s3 + $0x8] sm:$0xff]  ;;  %556 = vst [vmem:[#allocation3 + $0x1] sm:$0x1] %v2450_v9  ;;  %557 = vst [vmem:[#allocation4] sm:$0x1] %v2451_v10 }
  0x63   : > { %1917 = vmatprep.subr.mxu0 %v378_v2  ;;  %1924 = vmatprep.subr.mxu1 %v1780_v3  ;;  %558 = vst [vmem:[#allocation4 + $0x1] sm:$0x1] %v2451_v10  ;;  %559 = vst [vmem:[#allocation5] sm:$0xff] %v2451_v10 }
  0x64   : > { %1918 = vmatpush3.msra.mxu0 %v378_v2  ;;  %1919 = vmatprep.mubr.msk.f32.mxu0 %vm390_vm0, %v374_v4  ;;  %560 = vst [vmem:[#allocation5 + $0x18] sm:$0xff] %v2451_v10  ;;  %561 = vst [vmem:[#allocation5 + $0x8] sm:$0xff] %v2451_v10 }
  0x65   : > { %1925 = vmatpush3.msra.mxu1 %v1780_v3  ;;  %1926 = vmatprep.mubr.msk.f32.mxu1 %vm390_vm0, %v374_v4  ;;  %562 = vst [vmem:[#allocation5 + $0x10] sm:$0xff] %v2451_v10 }
  0x66   : > { %1920 = vmatmul.mubr.msk.f32.vlgmr.msra.gmra.mxu0 %vm390_vm0, %v375_v5  ;;  %1927 = vmatmul.mubr.msk.f32.vlgmr.msra.gmra.mxu1 %vm390_vm0, %v375_v5 }
  0x67   : > { %2187 = vset.pattern.permute.xlu0 %v2449_v7 }
  0x68   : > { %382 = vperm.xlu0 %2187, %v376_v6  }
  0x6c   : > { %387 = vperm.xlu0 %2187, %v377_v8  }
  0xe3   : > { %v383_v11 = vpop.permute.xlu0 %382 }
  0xe7   : > { %v388_v12 = vpop.permute.xlu0 %387 }
 0x126   : > { %v1921_v13 = vpop.f32.mrf.mxu0  ;;  %v1928_v14 = vpop.f32.mrf.mxu1 }
 0x127   : > { %v469_v15 = vadd.f32 %v1921_v13, %v388_v12  ;;  %v549_v16 = vadd.f32 %v1928_v14, %v388_v12 }
 0x128   : > { %v463_v17 = vpop.f32.mrf.mxu0  ;;  %v543_v18 = vpop.f32.mrf.mxu1 }
 0x129   : > { %473 = vst [vmem:[#allocation2] sm:$0xff] %v469_v15  ;;  %554 = vst [vmem:[#allocation2 + $0x8] sm:$0xff] %v549_v16  ;;  %v464_v19 = vadd.f32 %v463_v17, %v383_v11  ;;  %v544_v20 = vadd.f32 %v543_v18, %v383_v11 }
 0x12b   : > { %472 = vst [vmem:[#allocation2 + $0x10] sm:$0xff] %v464_v19  ;;  %553 = vst [vmem:[#allocation2 + $0x18] sm:$0xff] %v544_v20 }
 0x12c PF: > { %v567_v21 = vld [vmem:[%s2686_s23] sm:$0xff]  ;;  %v2713_v22 = vld [vmem:[%s2686_s23 + $0x10] sm:$0xff]  ;;  %v568_v23 = vld [vmem:[%s2686_s23 + $0x8] sm:$0xff]  ;;  %vm603_vm1 = vcmask 130048   ;;  %v2452_v63 = vmov 0   ;;  %s3180_s7 = sld [smem:[#allocation23_spill]] }
 0x12d   : > { %571 = vxpose.xlu0.b32.start [1/2] (short) %v567_v21, 128  ;;  %1089 = vxpose.xlu1.b32.start [1/2] (short) %v2713_v22, 128  ;;  %v2718_v26 = vld [vmem:[%s2686_s23 + $0x18] sm:$0xff]  ;;  %v2729_v28 = vld [vmem:[%s3137_s4 + $0x8] sm:$0xff]  ;;  %p1822_p6 = scmp.ne.s32.totalorder %s2426_s9, 1 }
 0x12e   : > { %1957 = vmatprep.subr.mxu1 %v568_v23  ;;  %v2724_v27 = vld [vmem:[%s3137_s4] sm:$0xff]  ;;  %s1591_s25 = sld [smem:[#allocation6]] (!%p1822_p6) }
 0x12f   : > { %1958 = vmatpush3.msra.mxu1 %v568_v23  ;;  %1961 = vmatprep.mubr.msk.f32.mxu1 %vm603_vm1, %v2724_v27 }
 0x130   : > { %v570_v24 = vld [vmem:[#allocation2] sm:$0xff]  ;;  %1959 = vmatprep.subr.mxu1 %v567_v21  ;;  %v1088_v29 = vld [vmem:[#allocation2 + $0x8] sm:$0xff] }
 0x131   : > { %1929 = vmatprep.subr.mxu0 %v570_v24  ;;  %572 = vxpose.xlu0.b32.end [2/2] (short) %v568_v23, 128 }
 0x132   : > { %v569_v25 = vld [vmem:[#allocation2 + $0x10] sm:$0xff]  ;;  %1930 = vmatpush3.msra.mxu0 %v570_v24  ;;  %1090 = vxpose.xlu1.b32.end [2/2] (short) %v2718_v26, 128  ;;  %v1087_v30 = vld [vmem:[#allocation2 + $0x18] sm:$0xff]  ;;  %v566_v0 = vld [vmem:[%s3180_s7 + $0x8] sm:$0xff] }
 0x133   : > { %1931 = vmatprep.subr.mxu0 %v569_v25  ;;  %1960 = vmatpush3.msra.mxu1 %v567_v21  ;;  %v565_v1 = vld [vmem:[%s3180_s7] sm:$0xff] }
 0x134   : > { %1932 = vmatpush3.msra.mxu0 %v569_v25  ;;  %1999 = vmatprep.subr.mxu1 %v1088_v29 }
 0x135   : > { %1962 = vmatmul.mubr.msk.f32.vlgmr.msra.gmra.mxu1 %vm603_vm1, %v2729_v28 }
 0x136   : > { %2000 = vmatpush3.msra.mxu1 %v1088_v29 }
 0x137   : > { %2001 = vmatprep.subr.mxu1 %v1087_v30 }
 0x138   : > { %2002 = vmatpush3.msra.mxu1 %v1087_v30 }
 0x150   : > { %2189 = vset.pattern.permute.xlu1 %v2452_v63 }
 0x15a   : > { %2188 = vset.pattern.permute.xlu0 %v2452_v63 }
 0x188   : > { %910 = vperm.xlu1 %2189, %v566_v0  }
 0x192   : > { %905 = vperm.xlu0 %2188, %v565_v1  }
 0x1a9   : > { %v587_v31 = vpop.trf.xlu0 }
 0x1aa   : > { %v1105_v32 = vpop.trf.xlu1  ;;  %1933 = vmatprep.mubr.msk.f32.mxu0 %vm603_vm1, %v587_v31 }
 0x1ab   : > { %2003 = vmatprep.mubr.msk.f32.mxu1 %vm603_vm1, %v1105_v32 }
 0x1ad   : > { %v588_v33 = vpop.trf.xlu0 }
 0x1ae   : > { %v1106_v34 = vpop.trf.xlu1  ;;  %1934 = vmatmul.mubr.msk.f32.vlgmr.msra.gmra.mxu0 %vm603_vm1, %v588_v33 }
 0x1af   : > { %2004 = vmatmul.mubr.msk.f32.vlgmr.msra.gmra.mxu1 %vm603_vm1, %v1106_v34 }
 0x1b1   : > { %v589_v35 = vpop.trf.xlu0 }
 0x1b2   : > { %v1107_v36 = vpop.trf.xlu1  ;;  %1936 = vmatprep.mubr.msk.f32.mxu0 %vm603_vm1, %v589_v35 }
 0x1b3   : > { %2006 = vmatprep.mubr.msk.f32.mxu1 %vm603_vm1, %v1107_v36 }
 0x1b5   : > { %v590_v37 = vpop.trf.xlu0 }
 0x1b6   : > { %v1108_v38 = vpop.trf.xlu1  ;;  %1937 = vmatmul.mubr.msk.f32.gmra.mxu0 %vm603_vm1, %v590_v37 }
 0x1b7   : > { %2007 = vmatmul.mubr.msk.f32.gmra.mxu1 %vm603_vm1, %v1108_v38 }
 0x1b9   : > { %v591_v39 = vpop.trf.xlu0 }
 0x1ba   : > { %v1109_v40 = vpop.trf.xlu1  ;;  %1939 = vmatprep.mubr.msk.f32.mxu0 %vm603_vm1, %v591_v39 }
 0x1bb   : > { %2009 = vmatprep.mubr.msk.f32.mxu1 %vm603_vm1, %v1109_v40 }
 0x1bd   : > { %v592_v41 = vpop.trf.xlu0 }
 0x1be   : > { %v1110_v42 = vpop.trf.xlu1  ;;  %1940 = vmatmul.mubr.msk.f32.gmra.mxu0 %vm603_vm1, %v592_v41 }
 0x1bf   : > { %2010 = vmatmul.mubr.msk.f32.gmra.mxu1 %vm603_vm1, %v1110_v42 }
 0x1c1   : > { %v593_v43 = vpop.trf.xlu0 }
 0x1c2   : > { %v1111_v44 = vpop.trf.xlu1  ;;  %1942 = vmatprep.mubr.msk.f32.mxu0 %vm603_vm1, %v593_v43 }
 0x1c3   : > { %2012 = vmatprep.mubr.msk.f32.mxu1 %vm603_vm1, %v1111_v44 }
 0x1c5   : > { %v594_v45 = vpop.trf.xlu0 }
 0x1c6   : > { %v1112_v46 = vpop.trf.xlu1  ;;  %1943 = vmatmul.mubr.msk.f32.gmra.mxu0 %vm603_vm1, %v594_v45 }
 0x1c7   : > { %2013 = vmatmul.mubr.msk.f32.gmra.mxu1 %vm603_vm1, %v1112_v46 }
 0x1c9   : > { %v595_v47 = vpop.trf.xlu0 }
 0x1ca   : > { %v1113_v48 = vpop.trf.xlu1  ;;  %1945 = vmatprep.mubr.msk.f32.mxu0 %vm603_vm1, %v595_v47 }
 0x1cb   : > { %2015 = vmatprep.mubr.msk.f32.mxu1 %vm603_vm1, %v1113_v48 }
 0x1cd   : > { %v596_v49 = vpop.trf.xlu0 }
 0x1ce   : > { %v1114_v50 = vpop.trf.xlu1  ;;  %1946 = vmatmul.mubr.msk.f32.gmra.mxu0 %vm603_vm1, %v596_v49 }
 0x1cf   : > { %2016 = vmatmul.mubr.msk.f32.gmra.mxu1 %vm603_vm1, %v1114_v50 }
 0x1d1   : > { %v597_v51 = vpop.trf.xlu0 }
 0x1d2   : > { %v1115_v52 = vpop.trf.xlu1  ;;  %1948 = vmatprep.mubr.msk.f32.mxu0 %vm603_vm1, %v597_v51 }
 0x1d3   : > { %2018 = vmatprep.mubr.msk.f32.mxu1 %vm603_vm1, %v1115_v52 }
 0x1d5   : > { %v598_v53 = vpop.trf.xlu0 }
 0x1d6   : > { %v1116_v54 = vpop.trf.xlu1  ;;  %1949 = vmatmul.mubr.msk.f32.gmra.mxu0 %vm603_vm1, %v598_v53 }
 0x1d7   : > { %2019 = vmatmul.mubr.msk.f32.gmra.mxu1 %vm603_vm1, %v1116_v54 }
 0x1d9   : > { %v599_v55 = vpop.trf.xlu0 }
 0x1da   : > { %v1117_v56 = vpop.trf.xlu1  ;;  %1951 = vmatprep.mubr.msk.f32.mxu0 %vm603_vm1, %v599_v55 }
 0x1db   : > { %2021 = vmatprep.mubr.msk.f32.mxu1 %vm603_vm1, %v1117_v56 }
 0x1dd   : > { %v600_v57 = vpop.trf.xlu0 }
 0x1de   : > { %v1118_v58 = vpop.trf.xlu1  ;;  %1952 = vmatmul.mubr.msk.f32.gmra.mxu0 %vm603_vm1, %v600_v57 }
 0x1df   : > { %2022 = vmatmul.mubr.msk.f32.gmra.mxu1 %vm603_vm1, %v1118_v58 }
 0x1e1   : > { %v601_v59 = vpop.trf.xlu0 }
 0x1e2   : > { %v1119_v60 = vpop.trf.xlu1  ;;  %1954 = vmatprep.mubr.msk.f32.mxu0 %vm603_vm1, %v601_v59 }
 0x1e3   : > { %2024 = vmatprep.mubr.msk.f32.mxu1 %vm603_vm1, %v1119_v60 }
 0x1e5   : > { %v602_v61 = vpop.trf.xlu0 }
 0x1e6   : > { %v1120_v62 = vpop.trf.xlu1  ;;  %1955 = vmatmul.mubr.msk.f32.gmra.mxu0 %vm603_vm1, %v602_v61 }
 0x1e7   : > { %2025 = vmatmul.mubr.msk.f32.gmra.mxu1 %vm603_vm1, %v1120_v62 }
 0x1f5   : > { %v2773_v2 = vpop.f32.mrf.mxu1 }
 0x1f7   : > { %v985_v3 = vpop.f32.mrf.mxu1 }
 0x20d   : > { %v2775_v4 = vpop.permute.xlu0 %905 }
 0x20e   : > { %3181 = vst [vmem:[#allocation21_spill] sm:$0xff] %v2775_v4  ;;  %v986_v6 = vadd.f32 %v985_v3, %v2775_v4 }
 0x210   : > { %1996 = vmatprep.mubr.f32.mxu0 %v986_v6 }
 0x26e   : > { %v2786_v10 = vpop.f32.mrf.mxu0 }
 0x26f   : > { %v2777_v5 = vpop.f32.mrf.mxu1 }
 0x270   : > { %v2790_v12 = vpop.f32.mrf.mxu0 }
 0x271   : > { %v2780_v7 = vpop.f32.mrf.mxu1 }
 0x276   : > { %v2792_v13 = vpop.f32.mrf.mxu0 }
 0x277   : > { %v2782_v8 = vpop.f32.mrf.mxu1 }
 0x278   : > { %v2796_v15 = vpop.f32.mrf.mxu0 }
 0x279   : > { %v2784_v9 = vpop.f32.mrf.mxu1 }
 0x27e   : > { %v2800_v17 = vpop.f32.mrf.mxu0 }
 0x27f   : > { %v2788_v11 = vpop.f32.mrf.mxu1  ;;  %v799_v45 = vmax.f32 %v2786_v10, %v2800_v17 }
 0x280   : > { %v2804_v19 = vpop.f32.mrf.mxu0  ;;  %v1317_v33 = vmax.f32 %v2777_v5, %v2788_v11 }
 0x281   : > { %v2794_v14 = vpop.f32.mrf.mxu1  ;;  %v798_v43 = vmax.f32 %v2790_v12, %v2804_v19 }
 0x282   : > { %v1316_v34 = vmax.f32 %v2780_v7, %v2794_v14 }
 0x286   : > { %v2806_v20 = vpop.f32.mrf.mxu0 }
 0x287   : > { %v2798_v16 = vpop.f32.mrf.mxu1  ;;  %v801_v46 = vmax.f32 %v2792_v13, %v2806_v20 }
 0x288   : > { %v2810_v23 = vpop.f32.mrf.mxu0  ;;  %v1319_v37 = vmax.f32 %v2782_v8, %v2798_v16 }
 0x289   : > { %v2802_v18 = vpop.f32.mrf.mxu1  ;;  %v800_v47 = vmax.f32 %v2796_v15, %v2810_v23 }
 0x28a   : > { %v1318_v39 = vmax.f32 %v2784_v9, %v2802_v18 }
 0x28e   : > { %v2814_v25 = vpop.f32.mrf.mxu0 }
 0x28f   : > { %v2808_v21 = vpop.f32.mrf.mxu1  ;;  %v803_v53 = vmax.f32 %v799_v45, %v2814_v25  ;;  %v824_v45 = vlaneseq }
 0x290   : > { %v2818_v30 = vpop.f32.mrf.mxu0  ;;  %v1321_v40 = vmax.f32 %v1317_v33, %v2808_v21 }
 0x291   : > { %v2812_v24 = vpop.f32.mrf.mxu1  ;;  %v802_v49 = vmax.f32 %v798_v43, %v2818_v30 }
 0x292   : > { %v1320_v41 = vmax.f32 %v1316_v34, %v2812_v24 }
 0x296   : > { %v2820_v31 = vpop.f32.mrf.mxu0 }
 0x297   : > { %v2816_v29 = vpop.f32.mrf.mxu1  ;;  %v805_v56 = vmax.f32 %v801_v46, %v2820_v31 }
 0x298   : > { %v2828_v35 = vpop.f32.mrf.mxu0  ;;  %v1323_v44 = vmax.f32 %v1319_v37, %v2816_v29 }
 0x299   : > { %v2822_v32 = vpop.f32.mrf.mxu1  ;;  %v804_v57 = vmax.f32 %v800_v47, %v2828_v35 }
 0x29a   : > { %v1322_v50 = vmax.f32 %v1318_v39, %v2822_v32 }
 0x29e   : > { %v2834_v38 = vpop.f32.mrf.mxu0 }
 0x29f   : > { %v2830_v36 = vpop.f32.mrf.mxu1  ;;  %v807_v60 = vmax.f32 %v803_v53, %v2834_v38  ;;  %v825_v53 = vshrl.u32 %v824_v45, 7 }
 0x2a0   : > { %v778_v48 = vpop.f32.mrf.mxu0  ;;  %v1325_v51 = vmax.f32 %v1321_v40, %v2830_v36 }
 0x2a1   : > { %v2840_v42 = vpop.f32.mrf.mxu1  ;;  %v806_v58 = vmax.f32 %v802_v49, %v778_v48 }
 0x2a2   : > { %v1324_v52 = vmax.f32 %v1320_v41, %v2840_v42 }
 0x2a3   : > { %v810_v6 = vmax.f32 %v806_v58, %v807_v60  ;;  %v2869_v58 = vsub.s32 0, %v825_v53 }
 0x2a4   : > { %v1328_v1 = vmax.f32 %v1324_v52, %v1325_v51  ;;  %v2865_v51 = vld [vmem:[#allocation3] sm:$0x1] }
 0x2a6   : > { %v1956_v54 = vpop.f32.mrf.mxu0 }
 0x2a7   : > { %v2856_v55 = vpop.f32.mrf.mxu1  ;;  %v809_v63 = vmax.f32 %v805_v56, %v1956_v54 }
 0x2a8   : > { %v1327_v59 = vmax.f32 %v1323_v44, %v2856_v55  ;;  %v788_v61 = vpop.f32.mrf.mxu0 }
 0x2a9   : > { %v2862_v62 = vpop.f32.mrf.mxu1  ;;  %v808_v0 = vmax.f32 %v804_v57, %v788_v61 }
 0x2aa   : > { %v1326_v3 = vmax.f32 %v1322_v50, %v2862_v62  ;;  %v2867_v50 = vld [vmem:[#allocation3 + $0x1] sm:$0x1] }
 0x2ab   : > { %v811_v33 = vmax.f32 %v808_v0, %v809_v63 }
 0x2ac   : > { %v1329_v34 = vmax.f32 %v1326_v3, %v1327_v59 }
 0x2ad   : > { %v812_v37 = vmax.f32 %v810_v6, %v811_v33 }
 0x2ae   : > { %v1330_v39 = vmax.f32 %v1328_v1, %v1329_v34 }
 0x2af   : > { %v813_v40 = vrot.slane %v812_v37, 4 }
 0x2b0   : > { %v1331_v41 = vrot.slane %v1330_v39, 4 }
 0x2b1   : > { %v814_v43 = vmax.f32 %v812_v37, %v813_v40 }
 0x2b2   : > { %v1332_v44 = vmax.f32 %v1330_v39, %v1331_v41 }
 0x2b3   : > { %v815_v46 = vrot.slane %v814_v43, 2 }
 0x2b4   : > { %v1333_v47 = vrot.slane %v1332_v44, 2 }
 0x2b5   : > { %v816_v49 = vmax.f32 %v814_v43, %v815_v46 }
 0x2b6   : > { %v1334_v4 = vmax.f32 %v1332_v44, %v1333_v47 }
 0x2b7   : > { %v817_v56 = vrot.slane %v816_v49, 1 }
 0x2b8   : > { %v1335_v57 = vrot.slane %v1334_v4, 1 }
 0x2b9   : > { %v818_v52 = vmax.f32 %v816_v49, %v817_v56 }
 0x2ba   : > { %v1336_v59 = vmax.f32 %v1334_v4, %v1335_v57 }
 0x2bb   : > { %v2872_v60 = vmax.f32 %v2865_v51, %v818_v52 }
 0x2bc   : > { %v2875_v63 = vmax.f32 %v2867_v50, %v1336_v59 }
 0x2bd   : > { %v827_v0 = vrot.slane %v2872_v60, %v2869_v58  ;;  %902 = vst [vmem:[#allocation3] sm:$0x1] %v2872_v60 }
 0x2be   : > { %v1338_v1 = vsub.f32 %v2867_v50, %v2875_v63  ;;  %1421 = vst [vmem:[#allocation3 + $0x1] sm:$0x1] %v2875_v63 }
 0x2bf   : > { %v843_v3 = vsub.f32 %v788_v61, %v827_v0  ;;  %v844_v6 = vsub.f32 %v1956_v54, %v827_v0  ;;  %v842_v4 = vsub.f32 %v2834_v38, %v827_v0  ;;  %v841_v33 = vsub.f32 %v778_v48, %v827_v0 }
 0x2c0   : > { %v840_v37 = vsub.f32 %v2820_v31, %v827_v0  ;;  %v839_v40 = vsub.f32 %v2828_v35, %v827_v0  ;;  %v838_v43 = vsub.f32 %v2814_v25, %v827_v0  ;;  %v837_v44 = vsub.f32 %v2818_v30, %v827_v0 }
 0x2c1   : > { %v875_v34 = vmul.f32 1.442695, %v844_v6  ;;  %v873_v39 = vmul.f32 1.442695, %v843_v3  ;;  %v871_v41 = vmul.f32 1.442695, %v842_v4  ;;  %v836_v61 = vsub.f32 %v2806_v20, %v827_v0 }
 0x2c2   : > { %v869_v45 = vmul.f32 1.442695, %v841_v33  ;;  %v867_v46 = vmul.f32 1.442695, %v840_v37  ;;  %v865_v54 = vmul.f32 1.442695, %v839_v40  ;;  %v835_v38 = vsub.f32 %v2810_v23, %v827_v0 }
 0x2c3   : > { %2190 = vpow2.f32 %v875_v34  ;;  %v863_v48 = vmul.f32 1.442695, %v838_v43  ;;  %v834_v31 = vsub.f32 %v2800_v17, %v827_v0  ;;  %v861_v35 = vmul.f32 1.442695, %v837_v44 }
 0x2c4   : > { %2192 = vpow2.f32 %v873_v39  ;;  %v831_v47 = vsub.f32 %v2796_v15, %v827_v0  ;;  %v2894_v25 = vrot.slane %v2875_v63, %v2869_v58  ;;  %v859_v30 = vmul.f32 1.442695, %v836_v61 }
 0x2c5   : > { %2194 = vpow2.f32 %v871_v41  ;;  %v830_v20 = vsub.f32 %v2786_v10, %v827_v0  ;;  %v857_v49 = vmul.f32 1.442695, %v835_v38  ;;  %v829_v23 = vsub.f32 %v2790_v12, %v827_v0 }
 0x2c6   : > { %2196 = vpow2.f32 %v869_v45  ;;  %v855_v53 = vmul.f32 1.442695, %v834_v31  ;;  %v1361_v17 = vsub.f32 %v2862_v62, %v2894_v25  ;;  %v849_v56 = vmul.f32 1.442695, %v831_v47 }
 0x2c7   : > { %2198 = vpow2.f32 %v867_v46  ;;  %v1362_v15 = vsub.f32 %v2856_v55, %v2894_v25  ;;  %v832_v57 = vsub.f32 %v2792_v13, %v827_v0  ;;  %v847_v52 = vmul.f32 1.442695, %v830_v20 }
 0x2c8   : > { %2200 = vpow2.f32 %v865_v54  ;;  %v845_v10 = vmul.f32 1.442695, %v829_v23  ;;  %v1360_v59 = vsub.f32 %v2830_v36, %v2894_v25  ;;  %v833_v12 = vsub.f32 %v2804_v19, %v827_v0 }
 0x2c9   : > { %2202 = vpow2.f32 %v863_v48  ;;  %v1391_v3 = vmul.f32 1.442695, %v1361_v17  ;;  %v1393_v62 = vmul.f32 1.442695, %v1362_v15  ;;  %v1359_v6 = vsub.f32 %v2840_v42, %v2894_v25 }
 0x2ca   : > { %2204 = vpow2.f32 %v861_v35  ;;  %v851_v55 = vmul.f32 1.442695, %v832_v57  ;;  %v1389_v13 = vmul.f32 1.442695, %v1360_v59  ;;  %v1358_v36 = vsub.f32 %v2816_v29, %v2894_v25 }
 0x2cb   : > { %2206 = vpow2.f32 %v859_v30  ;;  %v853_v19 = vmul.f32 1.442695, %v833_v12  ;;  %v1387_v42 = vmul.f32 1.442695, %v1359_v6  ;;  %v1357_v34 = vsub.f32 %v2822_v32, %v2894_v25 }
 0x2cc   : > { %2208 = vpow2.f32 %v857_v49  ;;  %v1385_v39 = vmul.f32 1.442695, %v1358_v36  ;;  %v1356_v40 = vsub.f32 %v2808_v21, %v2894_v25  ;;  %v1355_v32 = vsub.f32 %v2812_v24, %v2894_v25 }
 0x2cd   : > { %2210 = vpow2.f32 %v855_v53  ;;  %v1383_v45 = vmul.f32 1.442695, %v1357_v34  ;;  %v1349_v44 = vsub.f32 %v2784_v9, %v2894_v25  ;;  %v1348_v21 = vsub.f32 %v2777_v5, %v2894_v25  ;;  %v3007_v34 = vpop.permute.xlu1 %910 }
 0x2ce   : > { %2212 = vpow2.f32 %v849_v56  ;;  %v1381_v24 = vmul.f32 1.442695, %v1356_v40  ;;  %v1347_v54 = vsub.f32 %v2780_v7, %v2894_v25  ;;  %v1379_v9 = vmul.f32 1.442695, %v1355_v32 }
 0x2cf   : > { %2214 = vpow2.f32 %v847_v52  ;;  %v1354_v48 = vsub.f32 %v2798_v16, %v2894_v25  ;;  %v1350_v5 = vsub.f32 %v2782_v8, %v2894_v25  ;;  %v1367_v35 = vmul.f32 1.442695, %v1349_v44 }
 0x2d0   : > { %v2908_v4 = vpop.eup %2190  ;;  %2216 = vpow2.f32 %v845_v10  ;;  %v1353_v7 = vsub.f32 %v2802_v18, %v2894_v25  ;;  %v1365_v30 = vmul.f32 1.442695, %v1348_v21  ;;  %v1351_v16 = vsub.f32 %v2794_v14, %v2894_v25 }
 0x2d1   : > { %1964 = vmatprep.subr.mxu0 %v2908_v4  ;;  %v2913_v33 = vpop.eup %2192  ;;  %2218 = vpow2.f32 %v1391_v3  ;;  %v1363_v49 = vmul.f32 1.442695, %v1347_v54  ;;  %v1377_v8 = vmul.f32 1.442695, %v1354_v48  ;;  %v1352_v17 = vsub.f32 %v2788_v11, %v2894_v25 }
 0x2d2   : > { %1965 = vmatpush3.msra.mxu0 %v2908_v4  ;;  %v2916_v0 = vpop.eup %2194  ;;  %2220 = vpow2.f32 %v1393_v62  ;;  %v1369_v56 = vmul.f32 1.442695, %v1350_v5  ;;  %v1375_v15 = vmul.f32 1.442695, %v1353_v7  ;;  %v1371_v10 = vmul.f32 1.442695, %v1351_v16 }
 0x2d3   : > { %1966 = vmatprep.subr.mxu0 %v2913_v33  ;;  %v2921_v37 = vpop.eup %2196  ;;  %2222 = vpow2.f32 %v851_v55  ;;  %v1373_v12 = vmul.f32 1.442695, %v1352_v17  ;;  %v991_v21 = vadd.f32 %v2773_v2, %v3007_v34 }
 0x2d4   : > { %1967 = vmatpush3.msra.mxu0 %v2913_v33  ;;  %v2924_v29 = vpop.eup %2198  ;;  %2224 = vpow2.f32 %v1389_v13 }
 0x2d5   : > { %1968 = vmatprep.subr.mxu0 %v2916_v0  ;;  %v2929_v41 = vpop.eup %2200  ;;  %2226 = vpow2.f32 %v853_v19 }
 0x2d6   : > { %1969 = vmatpush3.msra.mxu0 %v2916_v0  ;;  %v2934_v43 = vpop.eup %2202  ;;  %2228 = vpow2.f32 %v1387_v42 }
 0x2d7   : > { %1970 = vmatprep.subr.mxu0 %v2921_v37  ;;  %v2939_v46 = vpop.eup %2204  ;;  %2230 = vpow2.f32 %v1385_v39 }
 0x2d8   : > { %1971 = vmatpush3.msra.mxu0 %v2921_v37  ;;  %v2944_v61 = vpop.eup %2206  ;;  %2232 = vpow2.f32 %v1383_v45 }
 0x2d9   : > { %1972 = vmatprep.subr.mxu0 %v2924_v29  ;;  %v2949_v38 = vpop.eup %2208  ;;  %2234 = vpow2.f32 %v1381_v24  ;;  %v820_v24 = vsub.f32 %v2865_v51, %v2872_v60 }
 0x2da   : > { %1973 = vmatpush3.msra.mxu0 %v2924_v29  ;;  %v2211_v31 = vpop.eup %2210  ;;  %2236 = vpow2.f32 %v1379_v9 }
 0x2db   : > { %1974 = vmatprep.subr.mxu0 %v2929_v41  ;;  %v2957_v47 = vpop.eup %2212  ;;  %2238 = vpow2.f32 %v1367_v35  ;;  %v821_v51 = vmul.f32 1.442695, %v820_v24 }
 0x2dc   : > { %1975 = vmatpush3.msra.mxu0 %v2929_v41  ;;  %v2962_v20 = vpop.eup %2214  ;;  %2240 = vpow2.f32 %v1365_v30 }
 0x2dd   : > { %1976 = vmatprep.subr.mxu0 %v2934_v43  ;;  %v2967_v23 = vpop.eup %2216  ;;  %2242 = vpow2.f32 %v1363_v49 }
 0x2de   : > { %1977 = vmatpush3.msra.mxu0 %v2934_v43  ;;  %v2970_v53 = vpop.eup %2218  ;;  %v879_v18 = vadd.f32 %v2967_v23, %v2962_v20  ;;  %2244 = vpow2.f32 %v1377_v8  ;;  %v877_v8 = vld [vmem:[#allocation4] sm:$0x1] }
 0x2df   : > { %1978 = vmatprep.subr.mxu0 %v2939_v46  ;;  %v2977_v14 = vpop.eup %2220  ;;  %2246 = vpow2.f32 %v1369_v56 }
 0x2e0   : > { %1979 = vmatpush3.msra.mxu0 %v2939_v46  ;;  %v2223_v57 = vpop.eup %2222  ;;  %v880_v52 = vadd.f32 %v2957_v47, %v879_v18  ;;  %2034 = vmatprep.subr.mxu1 %v2977_v14  ;;  %2248 = vpow2.f32 %v1375_v15 }
 0x2e1   : > { %1980 = vmatprep.subr.mxu0 %v2944_v61  ;;  %v2983_v59 = vpop.eup %2224  ;;  %2035 = vmatpush3.msra.mxu1 %v2977_v14  ;;  %2250 = vpow2.f32 %v1371_v10 }
 0x2e2   : > { %1981 = vmatpush3.msra.mxu0 %v2944_v61  ;;  %v2227_v11 = vpop.eup %2226  ;;  %v881_v25 = vadd.f32 %v2223_v57, %v880_v52  ;;  %2036 = vmatprep.subr.mxu1 %v2970_v53  ;;  %2252 = vpow2.f32 %v1373_v12  ;;  %v1396_v12 = vld [vmem:[#allocation4 + $0x1] sm:$0x1] }
 0x2e3   : > { %1982 = vmatprep.subr.mxu0 %v2949_v38  ;;  %v2989_v3 = vpop.eup %2228  ;;  %2037 = vmatpush3.msra.mxu1 %v2970_v53  ;;  %2254 = vpow2.f32 %v821_v51 }
 0x2e4   : > { %1983 = vmatpush3.msra.mxu0 %v2949_v38  ;;  %v882_v62 = vadd.f32 %v2227_v11, %v881_v25  ;;  %2038 = vmatprep.subr.mxu1 %v2983_v59  ;;  %v2994_v6 = vpop.eup %2230 }
 0x2e5   : > { %1984 = vmatprep.subr.mxu0 %v2211_v31  ;;  %2039 = vmatpush3.msra.mxu1 %v2983_v59  ;;  %v2998_v13 = vpop.eup %2232 }
 0x2e6   : > { %1985 = vmatpush3.msra.mxu0 %v2211_v31  ;;  %v883_v55 = vadd.f32 %v2211_v31, %v882_v62  ;;  %2040 = vmatprep.subr.mxu1 %v2989_v3  ;;  %v3003_v19 = vpop.eup %2234 }
 0x2e7   : > { %1986 = vmatprep.subr.mxu0 %v2227_v11  ;;  %2041 = vmatpush3.msra.mxu1 %v2989_v3  ;;  %v2237_v42 = vpop.eup %2236 }
 0x2e8   : > { %1987 = vmatpush3.msra.mxu0 %v2227_v11  ;;  %v884_v36 = vadd.f32 %v2949_v38, %v883_v55  ;;  %2042 = vmatprep.subr.mxu1 %v2994_v6  ;;  %v2239_v40 = vpop.eup %2238 }
 0x2e9   : > { %1988 = vmatprep.subr.mxu0 %v2223_v57  ;;  %2043 = vmatpush3.msra.mxu1 %v2994_v6  ;;  %v2241_v32 = vpop.eup %2240 }
 0x2ea   : > { %1989 = vmatpush3.msra.mxu0 %v2223_v57  ;;  %v885_v39 = vadd.f32 %v2944_v61, %v884_v36  ;;  %2044 = vmatprep.subr.mxu1 %v2998_v13  ;;  %v2243_v44 = vpop.eup %2242  ;;  %v995_v36 = vld [vmem:[#allocation5 + $0x18] sm:$0xff] }
 0x2eb   : > { %1990 = vmatprep.subr.mxu0 %v2957_v47  ;;  %2045 = vmatpush3.msra.mxu1 %v2998_v13  ;;  %v2245_v61 = vpop.eup %2244 }
 0x2ec   : > { %1991 = vmatpush3.msra.mxu0 %v2957_v47  ;;  %v886_v45 = vadd.f32 %v2939_v46, %v885_v39  ;;  %2046 = vmatprep.subr.mxu1 %v3003_v19  ;;  %v1398_v46 = vadd.f32 %v2243_v44, %v2241_v32  ;;  %v2247_v38 = vpop.eup %2246 }
 0x2ed   : > { %1992 = vmatprep.subr.mxu0 %v2962_v20  ;;  %2047 = vmatpush3.msra.mxu1 %v3003_v19  ;;  %v2249_v9 = vpop.eup %2248 }
 0x2ee   : > { %1993 = vmatpush3.msra.mxu0 %v2962_v20  ;;  %v887_v54 = vadd.f32 %v2934_v43, %v886_v45  ;;  %2048 = vmatprep.subr.mxu1 %v2237_v42  ;;  %v1399_v48 = vadd.f32 %v2239_v40, %v1398_v46  ;;  %v2251_v31 = vpop.eup %2250  ;;  %v1499_v46 = vld [vmem:[#allocation5 + $0x10] sm:$0xff] }
 0x2ef   : > { %1994 = vmatprep.subr.mxu0 %v2967_v23  ;;  %2049 = vmatpush3.msra.mxu1 %v2237_v42  ;;  %v2253_v5 = vpop.eup %2252 }
 0x2f0   : > { %1995 = vmatpush3.msra.mxu0 %v2967_v23  ;;  %v888_v2 = vadd.f32 %v2929_v41, %v887_v54  ;;  %2050 = vmatprep.subr.mxu1 %v2245_v61  ;;  %v1400_v43 = vadd.f32 %v2247_v38, %v1399_v48  ;;  %v2255_v23 = vpop.eup %2254 }
 0x2f1   : > { %1997 = vmatmul.mubr.f32.vlgmr.msra.gmra.mxu0 %v991_v21  ;;  %2027 = vmatprep.subr.mxu0 %v2718_v26  ;;  %v878_v15 = vmul.f32 %v2255_v23, %v877_v8  ;;  %v3182_v21 = vld [vmem:[#allocation21_spill] sm:$0xff] }
 0x2f2   : > { %2028 = vmatpush3.msra.mxu0 %v2718_v26  ;;  %2031 = vmatprep.mubr.msk.f32.mxu0 %vm603_vm1, %v2724_v27  ;;  %v889_v60 = vadd.f32 %v2924_v29, %v888_v2  ;;  %v1401_v26 = vadd.f32 %v2251_v31, %v1400_v43 }
 0x2f3   : > { %2029 = vmatprep.subr.mxu0 %v2713_v22  ;;  %2051 = vmatpush3.msra.mxu1 %v2245_v61 }
 0x2f4   : > { %2030 = vmatpush3.msra.mxu0 %v2713_v22  ;;  %v890_v41 = vadd.f32 %v2921_v37, %v889_v60  ;;  %2052 = vmatprep.subr.mxu1 %v2249_v9  ;;  %v1402_v29 = vadd.f32 %v2253_v5, %v1401_v26 }
 0x2f5   : > { %2032 = vmatmul.mubr.msk.f32.vlgmr.msra.gmra.mxu0 %vm603_vm1, %v2729_v28  ;;  %2053 = vmatpush3.msra.mxu1 %v2249_v9 }
 0x2f6   : > { %v891_v27 = vadd.f32 %v2916_v0, %v890_v41  ;;  %2054 = vmatprep.subr.mxu1 %v2253_v5  ;;  %v1403_v47 = vadd.f32 %v2249_v9, %v1402_v29 }
 0x2f7   : > { %2055 = vmatpush3.msra.mxu1 %v2253_v5 }
 0x2f8   : > { %v892_v35 = vadd.f32 %v2913_v33, %v891_v27  ;;  %2056 = vmatprep.subr.mxu1 %v2251_v31  ;;  %v1404_v37 = vadd.f32 %v2245_v61, %v1403_v47  ;;  %v1339_v33 = vmul.f32 1.442695, %v1338_v1 }
 0x2f9   : > { %2057 = vmatpush3.msra.mxu1 %v2251_v31 }
 0x2fa   : > { %v893_v22 = vadd.f32 %v2908_v4, %v892_v35  ;;  %2058 = vmatprep.subr.mxu1 %v2247_v38  ;;  %v1405_v7 = vadd.f32 %v2237_v42, %v1404_v37  ;;  %2256 = vpow2.f32 %v1339_v33 }
 0x2fb   : > { %2059 = vmatpush3.msra.mxu1 %v2247_v38  ;;  %v1498_v38 = vld [vmem:[#allocation5 + $0x8] sm:$0xff] }
 0x2fc   : > { %v894_v28 = vrot.slane %v893_v22, 4  ;;  %2060 = vmatprep.subr.mxu1 %v2239_v40  ;;  %v1406_v0 = vadd.f32 %v3003_v19, %v1405_v7  ;;  %v994_v19 = vld [vmem:[#allocation5] sm:$0xff] }
 0x2fd   : > { %2061 = vmatpush3.msra.mxu1 %v2239_v40 }
 0x2fe   : > { %v895_v30 = vadd.f32 %v894_v28, %v893_v22  ;;  %2062 = vmatprep.subr.mxu1 %v2241_v32  ;;  %v1407_v16 = vadd.f32 %v2998_v13, %v1406_v0 }
 0x2ff   : > { %2063 = vmatpush3.msra.mxu1 %v2241_v32 }
 0x300   : > { %v896_v20 = vrot.slane %v895_v30, 2  ;;  %2064 = vmatprep.subr.mxu1 %v2243_v44  ;;  %v1408_v49 = vadd.f32 %v2994_v6, %v1407_v16 }
 0x301   : > { %2065 = vmatpush3.msra.mxu1 %v2243_v44 }
 0x302   : > { %v897_v4 = vadd.f32 %v896_v20, %v895_v30  ;;  %v1409_v17 = vadd.f32 %v2989_v3, %v1408_v49 }
 0x304   : > { %v898_v18 = vrot.slane %v897_v4, 1  ;;  %v1410_v56 = vadd.f32 %v2983_v59, %v1409_v17  ;;  %v1000_v59 = vrot.slane %v2255_v23, %v2869_v58 }
 0x306   : > { %v899_v57 = vadd.f32 %v898_v18, %v897_v4  ;;  %v1411_v50 = vadd.f32 %v2970_v53, %v1410_v56  ;;  %v1003_v53 = vmul.f32 %v1000_v59, %v995_v36 }
 0x307   : > { %v2257_v25 = vpop.eup %2256 }
 0x308   : > { %v900_v63 = vadd.f32 %v899_v57, %v878_v15  ;;  %v1412_v1 = vadd.f32 %v2977_v14, %v1411_v50  ;;  %v1397_v55 = vmul.f32 %v2257_v25, %v1396_v12  ;;  %v1002_v14 = vmul.f32 %v1000_v59, %v994_v19 }
 0x309   : > { %v1504_v54 = vrot.slane %v2257_v25, %v2869_v58 }
 0x30a   : > { %901 = vst [vmem:[#allocation4] sm:$0x1] %v900_v63  ;;  %v1413_v52 = vrot.slane %v1412_v1, 4 }
 0x30b   : > { %v1507_v9 = vmul.f32 %v1504_v54, %v1499_v46  ;;  %v1506_v31 = vmul.f32 %v1504_v54, %v1498_v38 }
 0x30c   : > { %v1414_v10 = vadd.f32 %v1413_v52, %v1412_v1 }
 0x30e   : > { %v1415_v11 = vrot.slane %v1414_v10, 2 }
 0x310   : > { %v1416_v62 = vadd.f32 %v1415_v11, %v1414_v10 }
 0x312   : > { %v1417_v6 = vrot.slane %v1416_v62, 1 }
 0x314   : > { %v1418_v3 = vadd.f32 %v1417_v6, %v1416_v62 }
 0x316   : > { %v1419_v13 = vadd.f32 %v1418_v3, %v1397_v55 }
 0x318   : > { %1420 = vst [vmem:[#allocation4 + $0x1] sm:$0x1] %v1419_v13 }
 0x3b1   : > { %v1998_v42 = vpop.f32.mrf.mxu0 }
 0x3b2   : > { %v1080_v39 = vadd.f32 %v1998_v42, %v1003_v53 }
 0x3b3   : > { %v1070_v40 = vpop.f32.mrf.mxu0 }
 0x3b4   : > { %1082 = vst [vmem:[#allocation5 + $0x18] sm:$0xff] %v1080_v39  ;;  %v1079_v32 = vadd.f32 %v1070_v40, %v1002_v14 }
 0x3b5   : > { %v2033_v45 = vpop.f32.mrf.mxu0 }
 0x3b6   : > { %1081 = vst [vmem:[#allocation5] sm:$0xff] %v1079_v32  ;;  %v1494_v24 = vadd.f32 %v2033_v45, %v3007_v34 }
 0x3b7   : > { %v1488_v44 = vpop.f32.mrf.mxu0 }
 0x3b8   : > { %v1489_v61 = vadd.f32 %v1488_v44, %v3182_v21 }
 0x3ba   : > { %2066 = vmatprep.mubr.f32.mxu1 %v1489_v61 }
 0x3bb   : > { %2067 = vmatmul.mubr.f32.vlgmr.msra.gmra.mxu1 %v1494_v24 }
 0x47b   : > { %v2068_v2 = vpop.f32.mrf.mxu1 }
 0x47c   : > { %v1584_v48 = vadd.f32 %v2068_v2, %v1507_v9  ;;  %1590 = sbr.rel (%p1822_p6) target bundleno = 1178 (0x49a), region = 64 }
 0x47d   : > { %v1574_v51 = vpop.f32.mrf.mxu1 }
 0x47e   : > { %1586 = vst [vmem:[#allocation5 + $0x10] sm:$0xff] %v1584_v48  ;;  %v1583_v60 = vadd.f32 %v1574_v51, %v1506_v31 }
 0x480   : > { %1585 = vst [vmem:[#allocation5 + $0x8] sm:$0xff] %v1583_v60 }
 0x481   : > { %v1592_v43 = vld [vmem:[#allocation4] sm:$0x1]  ;;  %v1593_v34 = vld [vmem:[#allocation4 + $0x1] sm:$0x1]  ;;  %v1596_v41 = vld [vmem:[#allocation5] sm:$0xff]  ;;  %v1616_v22 = vstv %s1591_s25 }
 0x482   : > { %2258 = vrcp.f32 %v1592_v43  ;;  %v1597_v26 = vld [vmem:[#allocation5 + $0x18] sm:$0xff]  ;;  %v1621_v30 = vld [vmem:[%s2679_s21] sm:$0xff]  ;;  %v1622_v0 = vld [vmem:[%s2679_s21 + $0x8] sm:$0xff] }
 0x483   : > { %2260 = vrcp.f32 %v1593_v34  ;;  %v1623_v49 = vld [vmem:[%s2679_s21 + $0x10] sm:$0xff]  ;;  %v1624_v23 = vld [vmem:[%s2679_s21 + $0x18] sm:$0xff] }
 0x485   : > { %v1599_v47 = vld [vmem:[#allocation5 + $0x10] sm:$0xff] }
 0x487   : > { %v1598_v35 = vld [vmem:[#allocation5 + $0x8] sm:$0xff] }
 0x48f   : > { %v2259_v5 = vpop.eup %2258 }
 0x490   : > { %v2261_v27 = vpop.eup %2260  ;;  %v1605_v29 = vrot.slane %v2259_v5, %v2869_v58 }
 0x491   : > { %v1609_v37 = vrot.slane %v2261_v27, %v2869_v58 }
 0x492   : > { %v1612_v28 = vmul.f32 %v1605_v29, %v1596_v41  ;;  %v1613_v7 = vmul.f32 %v1605_v29, %v1597_v26 }
 0x493   : > { %v1614_v20 = vmul.f32 %v1609_v37, %v1598_v35  ;;  %v1615_v33 = vmul.f32 %v1609_v37, %v1599_v47 }
 0x494   : > { %v1617_v16 = vmul.f32 %v1616_v22, %v1612_v28  ;;  %v1618_v4 = vmul.f32 %v1616_v22, %v1613_v7 }
 0x495   : > { %v1619_v8 = vmul.f32 %v1616_v22, %v1614_v20  ;;  %v1620_v18 = vmul.f32 %v1616_v22, %v1615_v33 }
 0x496   : > { %v1625_v17 = vadd.f32 %v1621_v30, %v1617_v16  ;;  %v1626_v56 = vadd.f32 %v1622_v0, %v1618_v4 }
 0x497   : > { %v1627_v15 = vadd.f32 %v1623_v49, %v1619_v8  ;;  %v1628_v58 = vadd.f32 %v1624_v23, %v1620_v18 }
 0x498   : > { %1629 = vst [vmem:[%s2692_s22] sm:$0xff] %v1625_v17  ;;  %1630 = vst [vmem:[%s2692_s22 + $0x8] sm:$0xff] %v1626_v56 }
 0x499   : > { %1631 = vst [vmem:[%s2692_s22 + $0x10] sm:$0xff] %v1627_v15  ;;  %1632 = vst [vmem:[%s2692_s22 + $0x18] sm:$0xff] %v1628_v58 }
 0x49a PF: > { %s3183_s9 = sld [smem:[#allocation17_spill]]  ;;  %s1649_s5 = sshll.u32 %s2692_s22, 4  ;;  %s3071_s5 = int_to_ptr.vmem [resolvable:$true] %s1649_s5 }
 0x49b   : > { %s3184_s13 = sld [smem:[#allocation18_spill]]  ;;  %s1634_s6 = scalar_lea.sflag [#allocation9], %s2675_s29 }
 0x49c   : > { %s3185_s0 = sld [smem:[#allocation24_spill]]  ;;  %s2318_s23 = scalar_lea.vmem %s3071_s5, 512 }
 0x49d   : > { %p2319_p9 = scmp.ne.s32.totalorder %s3071_s5, %s2318_s23  ;;  %s2453_s18 = smov [#allocation12]  }
 0x49e   : > { %s2322_s26 = sshll.u32 %s2453_s18, 4  ;;  %s2323_s26 = int_to_ptr.vmem [resolvable:$false] %s2322_s26 }
 0x49f   : > { %s2324_s19 = scalar_lea.vmem %s2323_s26, 1024  ;;  %p2325_p3 = scmp.lt.s32.totalorder %s3071_s5, %s2323_s26 }
 0x4a0   : > { %s1824_s20 = sshll.u32 %s3183_s9, 7  ;;  %p2326_p13 = scmp.lt.s32.totalorder %s2324_s19, %s2318_s23 }
 0x4a1   : > { %p3186_p10 = scmp.ne.s32.totalorder %s3184_s13, 0 }
 0x4a2   : > { %s3068_s21 = scalar_lea.hbm %s3185_s0, %s1824_s20  ;;  %p2327_p0 = por %p2326_p13, %p2325_p3 }
 0x4a3   : > { %p2320_p7 = pnand %p2319_p9, %p3186_p10 }
 0x4a5   : > { %p2321_p4 = pneg %p2320_p7 }
 0x4a7   : > { %p2328_p2 = pnand %p2327_p0, %p2321_p4 }
 0x4a9   : > { %2331 = shalt.err (!%p2328_p2)
}
 0x4aa   : > { %s2332_s22 = scalar_lea.hbm %s3068_s21, 512  ;;  %s2336_s20 = scalar_lea.hbm %s3185_s0, 1024 }
 0x4ab   : > { %p2333_p11 = scmp.ne.s32.totalorder %s3068_s21, %s2332_s22  ;;  %p2337_p1 = scmp.lt.s32.totalorder %s3068_s21, %s3185_s0 }
 0x4ac   : > { %p2338_p8 = scmp.lt.s32.totalorder %s2336_s20, %s2332_s22 }
 0x4ad   : > { %p2334_p12 = pnand %p2333_p11, %p3186_p10 }
 0x4ae   : > { %p2339_p6 = por %p2338_p8, %p2337_p1 }
 0x4af   : > { %p2335_p5 = pneg %p2334_p12 }
 0x4b1   : > { %p2340_p9 = pnand %p2339_p6, %p2335_p5 }
 0x4b3   : > { %2343 = shalt.err (!%p2340_p9)
}
 0x4b4   : > { %s2454_s23 = smov 128   ;;  %s2455_s18 = smov 256  }
 0x4b5   : > { %s2456_s26 = smov 8  }
 0x4b6   : > { %2073 = dma.vmem_to_hbm [thread:$0]  (%p3186_p10), %s3071_s5, 512, %s3068_s21, %s1634_s6, %s2454_s23, %s2455_s18, %s2456_s26  }
 0x4b7 PF: > { %s3187_s19 = sld [smem:[#allocation16_spill]]  ;;  %p2087_p7 = scmp.ge.s32.totalorder %s2442_s12, 2 }
 0x4b8   : > { %s3188_s25 = sld [smem:[#allocation19_spill]] }
 0x4bd   : > { %s1664_s9 = sand.u32 1, %s3187_s19  }
 0x4be   : > { %p3189_p4 = scmp.ne.s32.totalorder %s3188_s25, 0  ;;  %s1665_s22 = scalar_lea.sflag [#allocation9], %s1664_s9 }
 0x4c0   : > { %p2083_p3 = pnand %p2087_p7, %p3189_p4 }
 0x4c2   : > { %p2084_p13 = pneg %p2083_p3 }
 0x4c4   : > { %2397 = dma.done.wait (%p2084_p13), %s1665_s22, 512  }
 0x4c5   : > { %2399 = vsyncadd (%p2084_p13), %s1665_s22, 4294966784  ;;  %s27_s12 = sadd.s32 1, %s2442_s12   ;;  %s3190_s13 = sld [smem:[#allocation20_spill]] }
 0x4c6   : > { %p24_p0 = scmp.ge.s32.totalorder %s27_s12, 6   ;;  %s3191_s26 = smov %s2406_s27 }
 0x4c7   : > { %s3192_s27 = smov %s2410_s28  ;;  %s3193_s28 = smov %s2646_s15 }
 0x4c8   : > { %s3194_s29 = smov %s2418_s30  ;;  %s3195_s30 = smov %s2422_s8 }
 0x4c9   : > { %s3196_s8 = smov %s2652_s24  ;;  %s3197_s9 = smov %s2434_s10 }
 0x4ca   : > { %s3198_s6 = smov %s2438_s11  ;;  %s3200_s11 = smov %s3206_s14 }
 0x4cb   : > { %s3199_s10 = smov %s3190_s13  ;;  %26 = sbr.rel (!%p24_p0) target bundleno = 16 (0x10), region = 121 }
 0x4d0   :  { %1670 = vsyncpa [#allocation8], 1 }
 0x4d1   :  { %1672 = vsyncpa [#allocation8 + $0x1], 1 }
 0x4d2   :  { %1673 = vsyncpa [#allocation11], 1 }
 0x4d3   :  { %1675 = vsyncpa [#allocation11 + $0x1], 1 }
 0x4d4   :  { %1676 = vsyncpa [#allocation9], 1 }
 0x4d5   :  { %1678 = vsyncpa [#allocation9 + $0x1], 1 }

</bundles_post_ra>
